<compile_context>
chip_gen: v6e
topology: v6e:2x2x1
jax: 0.10.0
libtpu: 0.0.40
codegen_flags: <defaults>
</compile_context>

<pallas_src>
import jax
import jax.numpy as jnp
from jax.experimental import pallas as pl
from jax.experimental.pallas import tpu as pltpu


# ------------------------------ Pallas kernel ------------------------------ #

def fused_forward_kernel(x_ref, wc_ref, bc_ref, w1_ref, b1_ref,
                         wd_ref, bd_ref, avg_ref, o_ref):
    """Whole EEG_CNN_Late_Prob_Fusion forward for one batch tile.

    x_ref  : (TB, C*T)   bf16  flattened EEG window
    wc_ref : (C*T, C*D)  bf16  block-diag conv-as-matmul weights (placeholder enc)
    bc_ref : (1, C*D)    f32   conv bias
    w1_ref : (C*D, C*J)  bf16  block-diag Linear(128,32) with eval-BN folded in
    b1_ref : (1, C*J)    f32   folded bias
    wd_ref : (C*J, 2*C)  bf16  block-diag per-head logit-difference weights
                               (lane c: l0_c - l1_c ; lane C+c: l1_c - l0_c)
    bd_ref : (1, 2*C)    f32
    avg_ref: (2*C, 128)  f32   head-mean + lane-scatter matrix (1/C in cols 0/1)
    o_ref  : (TB, 128)   f32   lane-dense output slab (probs in lanes 0/1)
    """
    # Placeholder encoder (Conv1d stride==kernel + ReLU) fused with flatten(start_dim=2)
    # as one block-diagonal matmul: bf16 x bf16 -> f32 accumulate on the MXU.
    feat = jnp.dot(x_ref[...], wc_ref[...], preferred_element_type=jnp.float32)
    feat = jnp.maximum(feat + bc_ref[...], 0.0)                     # (TB, C*D) f32

    # Eight [BN(eval) -> Dropout(id) -> Linear(128,32) -> ReLU] heads with BN already
    # folded into W1/b1 at init: one block-diagonal matmul + bias + ReLU.
    h = jnp.dot(feat.astype(jnp.bfloat16), w1_ref[...],
                preferred_element_type=jnp.float32) + b1_ref[...]
    h = jnp.maximum(h, 0.0)                                         # (TB, C*J) f32

    # Eight Linear(32,2) heads refolded to per-head logit differences (class-major):
    # lane c = l0_c - l1_c, lane C+c = l1_c - l0_c.
    d = jnp.dot(h.astype(jnp.bfloat16), wd_ref[...],
                preferred_element_type=jnp.float32) + bd_ref[...]   # (TB, 2*C) f32

    # 2-class softmax == sigmoid of the logit difference (numerically stable for any
    # magnitude); exp and the approximate reciprocal both run on the EUP slot.
    p = pl.reciprocal(1.0 + jnp.exp(-d), approx=True)               # per-head probs

    # Head mean + scatter into a 128-lane-dense slab via a tiny MXU matmul
    # (replaces cross-lane reductions / iota / where on XLU+VPU).
    o_ref[...] = jnp.dot(p, avg_ref[...], preferred_element_type=jnp.float32)


# ------------------------------- Parameters -------------------------------- #

def init_params(key, *, n_channels=8, time_len=32, kernel=8,
                d_model=128, fc_inner=32, num_classes=2):
    """Raw PyTorch-style params plus fused (folded, block-diagonal) kernel forms."""
    assert num_classes == 2, "late-prob-fusion heads are 2-class softmax"
    C, T, K = n_channels, time_len, kernel
    L = T // K
    n_filt = d_model // L
    assert L * K == T and n_filt * L == d_model, "placeholder encoder sizing"

    ks = jax.random.split(key, 10)
    conv_w = 0.1 * jax.random.normal(ks[0], (C, n_filt, K), jnp.float32)
    conv_b = 0.1 * jax.random.normal(ks[1], (C, n_filt), jnp.float32)
    gamma = 1.0 + 0.1 * jax.random.normal(ks[2], (C, d_model), jnp.float32)
    beta = 0.1 * jax.random.normal(ks[3], (C, d_model), jnp.float32)
    mean = 0.1 * jax.random.normal(ks[4], (C, d_model), jnp.float32)
    var = 0.5 + jnp.abs(jax.random.normal(ks[5], (C, d_model), jnp.float32))
    w1 = 0.05 * jax.random.normal(ks[6], (C, d_model, fc_inner), jnp.float32)
    b1 = 0.05 * jax.random.normal(ks[7], (C, fc_inner), jnp.float32)
    w2 = 0.05 * jax.random.normal(ks[8], (C, fc_inner, num_classes), jnp.float32)
    b2 = 0.05 * jax.random.normal(ks[9], (C, num_classes), jnp.float32)

    eyeL = jnp.eye(L, dtype=jnp.float32)
    eyeC = jnp.eye(C, dtype=jnp.float32)

    # ---- placeholder encoder (stride==kernel conv + flatten) as block-diag matmul ----
    # W_full[c, l*K+k, f*L+m] = conv_w[c,f,k] * (l==m)
    w_full = jnp.einsum('cfk,lm->clkfm', conv_w, eyeL).reshape(C, T, d_model)
    w_conv_big = jnp.einsum('ctd,ce->cted', w_full, eyeC).reshape(C * T, C * d_model)
    b_conv_big = jnp.repeat(conv_b, L, axis=1).reshape(1, C * d_model)

    # ---- fold eval-mode BatchNorm (eps=1e-5) into Linear(128,32) ----
    scale = gamma * jax.lax.rsqrt(var + 1e-5)              # (C, D)
    shift = beta - mean * scale                            # (C, D)
    w1_fold = scale[:, :, None] * w1                       # (C, D, J)
    b1_fold = b1 + jnp.einsum('cd,cdj->cj', shift, w1)     # (C, J)
    w1_big = jnp.einsum('cdj,ce->cdej', w1_fold, eyeC).reshape(C * d_model, C * fc_inner)
    b1_big = b1_fold.reshape(1, C * fc_inner)

    # ---- Linear(32,2) refolded to per-head logit differences (class-major lanes) ----
    wdiff = w2[:, :, 0] - w2[:, :, 1]                      # (C, J)
    bdiff = b2[:, 0] - b2[:, 1]                            # (C,)
    wdiff_bd = jnp.einsum('cj,ce->cje', wdiff, eyeC).reshape(C * fc_inner, C)
    w2d_big = jnp.concatenate([wdiff_bd, -wdiff_bd], axis=1)       # (C*J, 2*C)
    b2d_big = jnp.concatenate([bdiff, -bdiff]).reshape(1, 2 * C)

    # ---- head-mean + lane-scatter matrix: 1/C in column 0 (class-0 rows) / 1 ----
    avg = jnp.zeros((2 * C, 128), jnp.float32)
    avg = avg.at[:C, 0].set(1.0 / C).at[C:, 1].set(1.0 / C)

    return {
        # raw params (used by the pure-JAX reference)
        "conv_w": conv_w, "conv_b": conv_b,
        "bn_gamma": gamma, "bn_beta": beta, "bn_mean": mean, "bn_var": var,
        "w1": w1, "b1": b1, "w2": w2, "b2": b2,
        # fused params for the Pallas kernel (weights bf16, biases/epilogue f32)
        "w_conv_big": w_conv_big.astype(jnp.bfloat16), "b_conv_big": b_conv_big,
        "w1_big": w1_big.astype(jnp.bfloat16), "b1_big": b1_big,
        "w2d_big": w2d_big.astype(jnp.bfloat16), "b2d_big": b2d_big,
        "avg_mat": avg,
        # config (python ints)
        "n_channels": C, "time_len": T, "kernel": K, "n_filt": n_filt,
        "d_model": d_model, "fc_inner": fc_inner, "num_classes": num_classes,
    }


# -------------------------------- Forward ---------------------------------- #

def eeg_cnn_late_prob_fusion_forward(x, params, *, block_b=512):
    """Mirrors EEG_CNN_Late_Prob_Fusion.forward: x is a sequence; only x[0] is used."""
    x0 = x[0]                                  # (B, C, T) NCT layout
    B, C, T = x0.shape
    assert C == params["n_channels"] and T == params["time_len"]
    D = params["d_model"]
    J = params["fc_inner"]
    N = params["num_classes"]

    # Row-major flatten (no transpose): x2d[b, c*T + t] = x0[b, c, t]; bf16 halves
    # the activation DMA and the MXU pass count (dots accumulate in f32).
    x2d = x0.reshape(B, C * T).astype(jnp.bfloat16)

    # Batch tiling: tile rows enforced to a multiple of 16 (bf16 sublane pack, and
    # keeps all sublane stores unmasked).  Default 512 rows -> a single grid step
    # for small/medium batches (serial grid on v5e/v6e); larger batches get >=2
    # "parallel" steps which shard across v7x's two TensorCores.  Sweep
    # block_b in {512, 1024, 2048} for large-B deployments (cap ~1024 on v5e).
    min_pad = 16 * pl.cdiv(B, 16)
    block_b = max(16, min(int(block_b), min_pad))
    block_b = 16 * pl.cdiv(block_b, 16)
    n_blocks = pl.cdiv(B, block_b)
    Bp = n_blocks * block_b
    if Bp != B:
        x2d = jnp.pad(x2d, ((0, Bp - B), (0, 0)))

    const = lambda i: (0, 0)   # weights: same block every step -> fetched once

    out_pad = pl.pallas_call(
        fused_forward_kernel,
        out_shape=jax.ShapeDtypeStruct((Bp, 128), jnp.float32),
        grid_spec=pltpu.PrefetchScalarGridSpec(
            num_scalar_prefetch=0,
            grid=(n_blocks,),
            in_specs=[
                pl.BlockSpec((block_b, C * T), lambda i: (i, 0)),   # activations (bf16)
                pl.BlockSpec((C * T, C * D), const),                # conv (block-diag, bf16)
                pl.BlockSpec((1, C * D), const),                    # conv bias (f32)
                pl.BlockSpec((C * D, C * J), const),                # W1, BN folded (bf16)
                pl.BlockSpec((1, C * J), const),                    # b1, BN folded (f32)
                pl.BlockSpec((C * J, 2 * C), const),                # W2 logit-diff (bf16)
                pl.BlockSpec((1, 2 * C), const),                    # b2 logit-diff (f32)
                pl.BlockSpec((2 * C, 128), const),                  # head-mean matrix (f32)
            ],
            out_specs=pl.BlockSpec((block_b, 128), lambda i: (i, 0)),
        ),
        compiler_params=pltpu.CompilerParams(
            dimension_semantics=("parallel",),        # batch axis shards across TCs (v7x)
            vmem_limit_bytes=32 * 1024 * 1024,        # headroom for big tiles on v5e
        ),
    )(x2d,
      params["w_conv_big"], params["b_conv_big"],
      params["w1_big"], params["b1_big"],
      params["w2d_big"], params["b2d_big"],
      params["avg_mat"])

    return out_pad[:B, :N]


# -------------------------- Pure-JAX reference ------------------------------ #

def reference_forward(x0, params):
    B, C, T = x0.shape
    K = params["kernel"]
    L = T // K
    nf = params["n_filt"]
    xw = x0.reshape(B, C, L, K)
    conv = jnp.einsum('bclk,cfk->bcfl', xw, params["conv_w"]) \
        + params["conv_b"][None, :, :, None]
    conv = jnp.maximum(conv, 0.0)
    feat = conv.reshape(B, C, nf * L)                           # flatten(start_dim=2)
    inv_std = jax.lax.rsqrt(params["bn_var"][None] + 1e-5)
    xn = (feat - params["bn_mean"][None]) * inv_std * params["bn_gamma"][None] \
        + params["bn_beta"][None]
    h = jnp.maximum(jnp.einsum('bcd,cdj->bcj', xn, params["w1"])
                    + params["b1"][None], 0.0)
    logits = jnp.einsum('bcj,cjn->bcn', h, params["w2"]) + params["b2"][None]
    probs = jax.nn.softmax(logits, axis=-1)
    return probs.mean(axis=1)                                   # (B, num_classes)


# ---------------------------------- Main ------------------------------------ #

if __name__ == "__main__":
    key = jax.random.PRNGKey(0)
    k_x, k_p = jax.random.split(key)

    # 8 EEG channels, 32 time samples -> placeholder encoder gives d_model=128/channel.
    B, C, T = 12, 8, 32
    params = init_params(k_p, n_channels=C, time_len=T, kernel=8)

    x0 = jax.random.normal(k_x, (B, C, T), jnp.float32)

    # Default config: block_b clamps to the padded batch -> single 16-row grid step.
    fwd = jax.jit(lambda xb: eeg_cnn_late_prob_fusion_forward([xb], params))
    out = jax.block_until_ready(fwd(x0))
    ref = reference_forward(x0, params)

    assert out.shape == (B, params["num_classes"])
    assert bool(jnp.all(jnp.isfinite(out)))
    # Averaged 2-class softmax probabilities still sum to ~1 per row
    # (slack covers bf16 matmuls + approximate EUP reciprocal).
    assert bool(jnp.all(jnp.abs(jnp.sum(out, axis=1) - 1.0) < 5e-3))
    assert bool(jnp.allclose(out, ref, atol=5e-3, rtol=5e-3))

    # Multi-block path: B=24 with block_b=16 -> 2 grid steps + batch padding.
    x1 = jax.random.normal(jax.random.PRNGKey(1), (24, C, T), jnp.float32)
    fwd2 = jax.jit(lambda xb: eeg_cnn_late_prob_fusion_forward([xb], params, block_b=16))
    out2 = jax.block_until_ready(fwd2(x1))
    ref2 = reference_forward(x1, params)
    assert out2.shape == (24, params["num_classes"])
    assert bool(jnp.all(jnp.abs(jnp.sum(out2, axis=1) - 1.0) < 5e-3))
    assert bool(jnp.allclose(out2, ref2, atol=5e-3, rtol=5e-3))

    print("KERNEL_OK")
</pallas_src>

<mosaic_0001>
module attributes {stable_mosaic.version = 11 : i64} {
  func.func @fused_forward_kernel(%arg0: i32, %arg1: memref<16x256xbf16, #tpu.memory_space<vmem>>, %arg2: memref<256x1024xbf16, #tpu.memory_space<vmem>>, %arg3: memref<1x1024xf32, #tpu.memory_space<vmem>>, %arg4: memref<1024x256xbf16, #tpu.memory_space<vmem>>, %arg5: memref<1x256xf32, #tpu.memory_space<vmem>>, %arg6: memref<256x16xbf16, #tpu.memory_space<vmem>>, %arg7: memref<1x16xf32, #tpu.memory_space<vmem>>, %arg8: memref<16x128xf32, #tpu.memory_space<vmem>>, %arg9: memref<16x128xf32, #tpu.memory_space<vmem>>) attributes {dimension_semantics = [#tpu.dimension_semantics<parallel>], iteration_bounds = array<i64: 1>, scalar_prefetch = 0 : i64, scratch_operands = 0 : i64, tpu.core_type = #tpu.core_type<tc>, window_params = [{transform_indices = @transform_0, window_bounds = array<i64: 16, 256>}, {pipeline_mode = #tpu.pipeline_mode<synchronous>, transform_indices = @transform_1, window_bounds = array<i64: 256, 1024>}, {pipeline_mode = #tpu.pipeline_mode<synchronous>, transform_indices = @transform_2, window_bounds = array<i64: 1, 1024>}, {pipeline_mode = #tpu.pipeline_mode<synchronous>, transform_indices = @transform_3, window_bounds = array<i64: 1024, 256>}, {pipeline_mode = #tpu.pipeline_mode<synchronous>, transform_indices = @transform_4, window_bounds = array<i64: 1, 256>}, {pipeline_mode = #tpu.pipeline_mode<synchronous>, transform_indices = @transform_5, window_bounds = array<i64: 256, 16>}, {pipeline_mode = #tpu.pipeline_mode<synchronous>, transform_indices = @transform_6, window_bounds = array<i64: 1, 16>}, {pipeline_mode = #tpu.pipeline_mode<synchronous>, transform_indices = @transform_7, window_bounds = array<i64: 16, 128>}, {transform_indices = @transform_8, window_bounds = array<i64: 16, 128>}]} {
    %c0 = arith.constant 0 : index
    %c0_0 = arith.constant 0 : index
    %0 = vector.load %arg1[%c0, %c0_0] : memref<16x256xbf16, #tpu.memory_space<vmem>>, vector<16x256xbf16>
    %c0_1 = arith.constant 0 : index
    %c0_2 = arith.constant 0 : index
    %1 = vector.load %arg2[%c0_1, %c0_2] : memref<256x1024xbf16, #tpu.memory_space<vmem>>, vector<256x1024xbf16>
    %cst = arith.constant dense<0.000000e+00> : vector<16x1024xf32>
    %2 = tpu.matmul %0, %1, %cst {dimension_numbers = #tpu.dot_dimension_numbers<[1], [0], [0], [1], [0, 0, 1, 1], [], []>} : vector<16x256xbf16>, vector<256x1024xbf16>, vector<16x1024xf32> -> vector<16x1024xf32>
    %c0_3 = arith.constant 0 : index
    %c0_4 = arith.constant 0 : index
    %3 = vector.load %arg3[%c0_3, %c0_4] : memref<1x1024xf32, #tpu.memory_space<vmem>>, vector<1x1024xf32>
    %4 = vector.broadcast %3 : vector<1x1024xf32> to vector<16x1024xf32>
    %5 = arith.addf %2, %4 : vector<16x1024xf32>
    %cst_5 = arith.constant 0.000000e+00 : f32
    %6 = vector.broadcast %cst_5 : f32 to vector<16x1024xf32>
    %7 = arith.maximumf %5, %6 : vector<16x1024xf32>
    %8 = arith.truncf %7 : vector<16x1024xf32> to vector<16x1024xbf16>
    %c0_6 = arith.constant 0 : index
    %c0_7 = arith.constant 0 : index
    %9 = vector.load %arg4[%c0_6, %c0_7] : memref<1024x256xbf16, #tpu.memory_space<vmem>>, vector<1024x256xbf16>
    %cst_8 = arith.constant dense<0.000000e+00> : vector<16x256xf32>
    %10 = tpu.matmul %8, %9, %cst_8 {dimension_numbers = #tpu.dot_dimension_numbers<[1], [0], [0], [1], [0, 0, 1, 1], [], []>} : vector<16x1024xbf16>, vector<1024x256xbf16>, vector<16x256xf32> -> vector<16x256xf32>
    %c0_9 = arith.constant 0 : index
    %c0_10 = arith.constant 0 : index
    %11 = vector.load %arg5[%c0_9, %c0_10] : memref<1x256xf32, #tpu.memory_space<vmem>>, vector<1x256xf32>
    %12 = vector.broadcast %11 : vector<1x256xf32> to vector<16x256xf32>
    %13 = arith.addf %10, %12 : vector<16x256xf32>
    %cst_11 = arith.constant 0.000000e+00 : f32
    %14 = vector.broadcast %cst_11 : f32 to vector<16x256xf32>
    %15 = arith.maximumf %13, %14 : vector<16x256xf32>
    %16 = arith.truncf %15 : vector<16x256xf32> to vector<16x256xbf16>
    %c0_12 = arith.constant 0 : index
    %c0_13 = arith.constant 0 : index
    %17 = vector.load %arg6[%c0_12, %c0_13] : memref<256x16xbf16, #tpu.memory_space<vmem>>, vector<256x16xbf16>
    %cst_14 = arith.constant dense<0.000000e+00> : vector<16x16xf32>
    %18 = tpu.matmul %16, %17, %cst_14 {dimension_numbers = #tpu.dot_dimension_numbers<[1], [0], [0], [1], [0, 0, 1, 1], [], []>} : vector<16x256xbf16>, vector<256x16xbf16>, vector<16x16xf32> -> vector<16x16xf32>
    %c0_15 = arith.constant 0 : index
    %c0_16 = arith.constant 0 : index
    %19 = vector.load %arg7[%c0_15, %c0_16] : memref<1x16xf32, #tpu.memory_space<vmem>>, vector<1x16xf32>
    %20 = vector.broadcast %19 : vector<1x16xf32> to vector<16x16xf32>
    %21 = arith.addf %18, %20 : vector<16x16xf32>
    %cst_17 = arith.constant 0.000000e+00 : f32
    %22 = vector.broadcast %cst_17 : f32 to vector<16x16xf32>
    %23 = arith.subf %22, %21 : vector<16x16xf32>
    %24 = math.exp %23 : vector<16x16xf32>
    %cst_18 = arith.constant 1.000000e+00 : f32
    %25 = vector.broadcast %cst_18 : f32 to vector<16x16xf32>
    %26 = arith.addf %25, %24 : vector<16x16xf32>
    %27 = tpu.reciprocal %26 {approx = true} : vector<16x16xf32> -> vector<16x16xf32>
    %c0_19 = arith.constant 0 : index
    %c0_20 = arith.constant 0 : index
    %28 = vector.load %arg8[%c0_19, %c0_20] : memref<16x128xf32, #tpu.memory_space<vmem>>, vector<16x128xf32>
    %cst_21 = arith.constant dense<0.000000e+00> : vector<16x128xf32>
    %29 = tpu.matmul %27, %28, %cst_21 {dimension_numbers = #tpu.dot_dimension_numbers<[1], [0], [0], [1], [0, 0, 1, 1], [], []>} : vector<16x16xf32>, vector<16x128xf32>, vector<16x128xf32> -> vector<16x128xf32>
    %c0_22 = arith.constant 0 : index
    %c0_23 = arith.constant 0 : index
    %30 = vector.load %arg9[%c0_22, %c0_23] : memref<16x128xf32, #tpu.memory_space<vmem>>, vector<16x128xf32>
    tpu.vector_store %arg9[%c0_22, %c0_23], %29 {strides = array<i32>} : memref<16x128xf32, #tpu.memory_space<vmem>>, vector<16x128xf32>,
    return
  }
  func.func @transform_0(%arg0: i32) -> (i32, i32) {
    %c0_i32 = arith.constant 0 : i32
    %c0_i32_0 = arith.constant 0 : i32
    return %arg0, %c0_i32 : i32, i32
  }
  func.func @transform_1(%arg0: i32) -> (i32, i32) {
    %c0_i32 = arith.constant 0 : i32
    %c0_i32_0 = arith.constant 0 : i32
    %c0_i32_1 = arith.constant 0 : i32
    return %c0_i32, %c0_i32_0 : i32, i32
  }
  func.func @transform_2(%arg0: i32) -> (i32, i32) {
    %c0_i32 = arith.constant 0 : i32
    %c0_i32_0 = arith.constant 0 : i32
    %c0_i32_1 = arith.constant 0 : i32
    return %c0_i32, %c0_i32_0 : i32, i32
  }
  func.func @transform_3(%arg0: i32) -> (i32, i32) {
    %c0_i32 = arith.constant 0 : i32
    %c0_i32_0 = arith.constant 0 : i32
    %c0_i32_1 = arith.constant 0 : i32
    return %c0_i32, %c0_i32_0 : i32, i32
  }
  func.func @transform_4(%arg0: i32) -> (i32, i32) {
    %c0_i32 = arith.constant 0 : i32
    %c0_i32_0 = arith.constant 0 : i32
    %c0_i32_1 = arith.constant 0 : i32
    return %c0_i32, %c0_i32_0 : i32, i32
  }
  func.func @transform_5(%arg0: i32) -> (i32, i32) {
    %c0_i32 = arith.constant 0 : i32
    %c0_i32_0 = arith.constant 0 : i32
    %c0_i32_1 = arith.constant 0 : i32
    return %c0_i32, %c0_i32_0 : i32, i32
  }
  func.func @transform_6(%arg0: i32) -> (i32, i32) {
    %c0_i32 = arith.constant 0 : i32
    %c0_i32_0 = arith.constant 0 : i32
    %c0_i32_1 = arith.constant 0 : i32
    return %c0_i32, %c0_i32_0 : i32, i32
  }
  func.func @transform_7(%arg0: i32) -> (i32, i32) {
    %c0_i32 = arith.constant 0 : i32
    %c0_i32_0 = arith.constant 0 : i32
    %c0_i32_1 = arith.constant 0 : i32
    return %c0_i32, %c0_i32_0 : i32, i32
  }
  func.func @transform_8(%arg0: i32) -> (i32, i32) {
    %c0_i32 = arith.constant 0 : i32
    %c0_i32_0 = arith.constant 0 : i32
    return %arg0, %c0_i32 : i32, i32
  }
}

</mosaic_0001>

<bundles_post_ra>
// kernel: _lambda_.1
= control target key start
LH: loop header
LB: loop body
LE: loop exit
PB: predicated region body
PF: predicated region fallthrough
CT: control target
= control target key end

     0   :  { %13 = vsyncpa [#allocation3], 0  ;;  %s3063_s0 = inlined_call_operand.vmem [shape: bf16[16,256], index: 0, kind: input, shape index: {}]   ;;  %s3064_s1 = inlined_call_operand.hbm [shape: bf16[256,1024], index: 1, kind: input, shape index: {}]   ;;  %s3065_s2 = inlined_call_operand.vmem [shape: f32[1,1024], index: 2, kind: input, shape index: {}]   ;;  %s3066_s3 = inlined_call_operand.hbm [shape: bf16[1024,256], index: 3, kind: input, shape index: {}]   ;;  %s3067_s4 = inlined_call_operand.vmem [shape: f32[1,256], index: 4, kind: input, shape index: {}]   ;;  %s3068_s5 = inlined_call_operand.vmem [shape: bf16[256,16], index: 5, kind: input, shape index: {}]   ;;  %s3069_s6 = inlined_call_operand.vmem [shape: f32[1,16], index: 6, kind: input, shape index: {}]   ;;  %s3070_s7 = inlined_call_operand.vmem [shape: f32[16,128], index: 7, kind: input, shape index: {}]   ;;  %s3071_s8 = inlined_call_operand.vmem [shape: f32[16,128], index: 8, kind: output, shape index: {}]  }
   0x1   :  { %14 = vsyncpa [#allocation5], 0  ;;  %s2891_s27 = smov [#allocation2]  }
   0x2   :  { %s22_s28 = sshll.u32 %s2891_s27, 4  ;;  %s23_s28 = int_to_ptr.vmem [resolvable:$true] %s22_s28 }
   0x3   :  { %s2855_s29 = scalar_lea.vmem %s23_s28, 16384  ;;  %p2860_p1 = scmp.lt.s32.totalorder %s23_s28, %s23_s28 }
   0x4   :  { %p2856_p0 = scmp.ne.s32.totalorder %s23_s28, %s2855_s29  ;;  %p2861_p2 = scmp.lt.s32.totalorder %s2855_s29, %s2855_s29 }
   0x6   :  { %p2862_p3 = por %p2861_p2, %p2860_p1 }
   0x8   :  { %p2863_p4 = pnand %p2862_p3, %p2856_p0 }
   0xa   :  { %2866 = shalt.err (!%p2863_p4)
}
   0xb   :  { %s2892_s30 = smov 512   ;;  %s2893_s9 = smov 32  }
   0xc   :  { %28 = dma.hbm_to_vmem [thread:$0]  %s3064_s1, 16384, %s23_s28, [#allocation3], %s2892_s30, %s2892_s30, %s2893_s9  }
   0xd   :  { %s2894_s12 = smov [#allocation4]  }
   0xe   :  { %s36_s13 = sshll.u32 %s2894_s12, 4  ;;  %s37_s13 = int_to_ptr.vmem [resolvable:$true] %s36_s13 }
   0xf   :  { %s2875_s14 = scalar_lea.vmem %s37_s13, 16384  ;;  %p2880_p6 = scmp.lt.s32.totalorder %s37_s13, %s37_s13 }
  0x10   :  { %p2876_p5 = scmp.ne.s32.totalorder %s37_s13, %s2875_s14  ;;  %p2881_p7 = scmp.lt.s32.totalorder %s2875_s14, %s2875_s14 }
  0x12   :  { %p2882_p8 = por %p2881_p7, %p2880_p6 }
  0x14   :  { %p2883_p9 = pnand %p2882_p8, %p2876_p5 }
  0x16   :  { %2886 = shalt.err (!%p2883_p9)
}
  0x17   :  { %s2895_s15 = smov 128   ;;  %s2896_s16 = smov 8  }
  0x18   :  { %42 = dma.hbm_to_vmem [thread:$0]  %s3066_s3, 16384, %s37_s13, [#allocation5], %s2895_s15, %s2895_s15, %s2896_s16  }
  0x19   :  { %2887 = dma.done.wait [#allocation3], 16384  }
  0x1a   :  { %2888 = vsyncadd [#allocation3], 4294950912 }
  0x1b   :  { %2889 = dma.done.wait [#allocation5], 16384  }
  0x1c   :  { %2890 = vsyncadd [#allocation5], 4294950912  ;;  %v116_v0 = vld [vmem:[#allocation2 + $0x1c0] sm:$0xff]  ;;  %v117_v2 = vld [vmem:[#allocation2 + $0x1c8] sm:$0xff]  ;;  %vm2222_vm0 = vcmask 130048  }
  0x1d   :  { %v120_v1 = vld [vmem:[#allocation2 + $0x1e0] sm:$0xff]  ;;  %v121_v4 = vld [vmem:[#allocation2 + $0x1e8] sm:$0xff] }
  0x1e   :  { %v2371_v3 = vcombine.high %v116_v0, %v120_v1  ;;  %v2370_v5 = vcombine.low %v116_v0, %v120_v1  ;;  %v108_v6 = vld [vmem:[#allocation2 + $0x180] sm:$0xff]  ;;  %v2373_v8 = vcombine.high %v117_v2, %v121_v4  ;;  %v2372_v9 = vcombine.low %v117_v2, %v121_v4  ;;  %v109_v11 = vld [vmem:[#allocation2 + $0x188] sm:$0xff] }
  0x1f   :  { %v112_v7 = vld [vmem:[#allocation2 + $0x1a0] sm:$0xff]  ;;  %v113_v12 = vld [vmem:[#allocation2 + $0x1a8] sm:$0xff] }
  0x20   :  { %v2363_v10 = vcombine.high %v108_v6, %v112_v7  ;;  %v100_v13 = vld [vmem:[#allocation2 + $0x140] sm:$0xff]  ;;  %880 = vmatprep.subr.bf16.mxu0 %v2371_v3  ;;  %v2365_v14 = vcombine.high %v109_v11, %v113_v12  ;;  %v101_v16 = vld [vmem:[#allocation2 + $0x148] sm:$0xff]  ;;  %923 = vmatprep.subr.bf16.mxu1 %v2373_v8  ;;  %v2362_v18 = vcombine.low %v108_v6, %v112_v7 }
  0x21   :  { %v104_v15 = vld [vmem:[#allocation2 + $0x160] sm:$0xff]  ;;  %v105_v17 = vld [vmem:[#allocation2 + $0x168] sm:$0xff]  ;;  %881 = vmatpush1.bf16.msra.mxu0 %v2370_v5  ;;  %924 = vmatpush1.bf16.msra.mxu1 %v2372_v9  ;;  %v2364_v19 = vcombine.low %v109_v11, %v113_v12 }
  0x22   :  { %882 = vmatprep.subr.bf16.mxu0 %v2363_v10  ;;  %v2355_v20 = vcombine.high %v100_v13, %v104_v15  ;;  %925 = vmatprep.subr.bf16.mxu1 %v2365_v14  ;;  %v2357_v21 = vcombine.high %v101_v16, %v105_v17  ;;  %v92_v22 = vld [vmem:[#allocation2 + $0x100] sm:$0xff]  ;;  %v93_v24 = vld [vmem:[#allocation2 + $0x108] sm:$0xff]  ;;  %v2354_v26 = vcombine.low %v100_v13, %v104_v15 }
  0x23   :  { %v96_v23 = vld [vmem:[#allocation2 + $0x120] sm:$0xff]  ;;  %v97_v25 = vld [vmem:[#allocation2 + $0x128] sm:$0xff]  ;;  %v2356_v27 = vcombine.low %v101_v16, %v105_v17 }
  0x24   :  { %v2347_v28 = vcombine.high %v92_v22, %v96_v23  ;;  %v2349_v29 = vcombine.high %v93_v24, %v97_v25  ;;  %v84_v30 = vld [vmem:[#allocation2 + $0xc0] sm:$0xff]  ;;  %v85_v32 = vld [vmem:[#allocation2 + $0xc8] sm:$0xff]  ;;  %v2346_v34 = vcombine.low %v92_v22, %v96_v23  ;;  %v2348_v35 = vcombine.low %v93_v24, %v97_v25 }
  0x25   :  { %883 = vmatpush1.bf16.msra.mxu0 %v2362_v18  ;;  %926 = vmatpush1.bf16.msra.mxu1 %v2364_v19  ;;  %v88_v31 = vld [vmem:[#allocation2 + $0xe0] sm:$0xff]  ;;  %v89_v33 = vld [vmem:[#allocation2 + $0xe8] sm:$0xff] }
  0x26   :  { %884 = vmatprep.subr.bf16.mxu0 %v2355_v20  ;;  %927 = vmatprep.subr.bf16.mxu1 %v2357_v21  ;;  %v2339_v36 = vcombine.high %v84_v30, %v88_v31  ;;  %v2341_v37 = vcombine.high %v85_v32, %v89_v33  ;;  %v76_v38 = vld [vmem:[#allocation2 + $0x80] sm:$0xff]  ;;  %v77_v40 = vld [vmem:[#allocation2 + $0x88] sm:$0xff]  ;;  %v2338_v42 = vcombine.low %v84_v30, %v88_v31 }
  0x27   :  { %v80_v39 = vld [vmem:[#allocation2 + $0xa0] sm:$0xff]  ;;  %v81_v41 = vld [vmem:[#allocation2 + $0xa8] sm:$0xff]  ;;  %v2340_v43 = vcombine.low %v85_v32, %v89_v33 }
  0x28   :  { %v2331_v44 = vcombine.high %v76_v38, %v80_v39  ;;  %v2333_v45 = vcombine.high %v77_v40, %v81_v41  ;;  %v68_v46 = vld [vmem:[#allocation2 + $0x40] sm:$0xff]  ;;  %v69_v48 = vld [vmem:[#allocation2 + $0x48] sm:$0xff]  ;;  %v2330_v50 = vcombine.low %v76_v38, %v80_v39  ;;  %v2332_v51 = vcombine.low %v77_v40, %v81_v41 }
  0x29   :  { %885 = vmatpush1.bf16.msra.mxu0 %v2354_v26  ;;  %928 = vmatpush1.bf16.msra.mxu1 %v2356_v27  ;;  %v72_v47 = vld [vmem:[#allocation2 + $0x60] sm:$0xff]  ;;  %v73_v49 = vld [vmem:[#allocation2 + $0x68] sm:$0xff] }
  0x2a   :  { %886 = vmatprep.subr.bf16.mxu0 %v2347_v28  ;;  %929 = vmatprep.subr.bf16.mxu1 %v2349_v29  ;;  %v2323_v52 = vcombine.high %v68_v46, %v72_v47  ;;  %v2325_v53 = vcombine.high %v69_v48, %v73_v49  ;;  %v60_v54 = vld [vmem:[#allocation2] sm:$0xff]  ;;  %v61_v57 = vld [vmem:[#allocation2 + $0x8] sm:$0xff]  ;;  %v2322_v59 = vcombine.low %v68_v46, %v72_v47 }
  0x2b   :  { %v64_v55 = vld [vmem:[#allocation2 + $0x20] sm:$0xff]  ;;  %v65_v58 = vld [vmem:[#allocation2 + $0x28] sm:$0xff]  ;;  %v2324_v60 = vcombine.low %v69_v48, %v73_v49 }
  0x2c   :  { %v2951_v56 = vld [vmem:[%s3063_s0 + $0x4] ss:$8 sps:$4 sm:$0xff]   ;;  %v2315_v61 = vcombine.high %v60_v54, %v64_v55  ;;  %v2317_v62 = vcombine.high %v61_v57, %v65_v58  ;;  %v2314_v3 = vcombine.low %v60_v54, %v64_v55  ;;  %v2316_v4 = vcombine.low %v61_v57, %v65_v58 }
  0x2d   :  { %887 = vmatpush1.bf16.msra.mxu0 %v2346_v34  ;;  %930 = vmatpush1.bf16.msra.mxu1 %v2348_v35  ;;  %v180_v63 = vld [vmem:[#allocation2 + $0x3c0] sm:$0xff]  ;;  %v181_v1 = vld [vmem:[#allocation2 + $0x3c8] sm:$0xff] }
  0x2e   :  { %888 = vmatprep.subr.bf16.mxu0 %v2339_v36  ;;  %931 = vmatprep.subr.bf16.mxu1 %v2341_v37  ;;  %v184_v0 = vld [vmem:[#allocation2 + $0x3e0] sm:$0xff]  ;;  %v185_v2 = vld [vmem:[#allocation2 + $0x3e8] sm:$0xff] }
  0x2f   :  { %912 = vmatprep.mubr.bf16.mxu0 %v2951_v56  ;;  %955 = vmatprep.mubr.bf16.mxu1 %v2951_v56  ;;  %v2435_v5 = vcombine.high %v180_v63, %v184_v0  ;;  %v2437_v6 = vcombine.high %v181_v1, %v185_v2  ;;  %v172_v7 = vld [vmem:[#allocation2 + $0x380] sm:$0xff]  ;;  %v173_v9 = vld [vmem:[#allocation2 + $0x388] sm:$0xff]  ;;  %v2434_v11 = vcombine.low %v180_v63, %v184_v0  ;;  %v118_v0 = vld [vmem:[#allocation2 + $0x1d0] sm:$0xff] }
  0x30   :  { %v176_v8 = vld [vmem:[#allocation2 + $0x3a0] sm:$0xff]  ;;  %v177_v10 = vld [vmem:[#allocation2 + $0x3a8] sm:$0xff]  ;;  %v2436_v12 = vcombine.low %v181_v1, %v185_v2  ;;  %v122_v1 = vld [vmem:[#allocation2 + $0x1f0] sm:$0xff] }
  0x31   :  { %889 = vmatpush1.bf16.msra.mxu0 %v2338_v42  ;;  %932 = vmatpush1.bf16.msra.mxu1 %v2340_v43  ;;  %v2427_v13 = vcombine.high %v172_v7, %v176_v8  ;;  %v2429_v14 = vcombine.high %v173_v9, %v177_v10  ;;  %v164_v15 = vld [vmem:[#allocation2 + $0x340] sm:$0xff]  ;;  %v165_v17 = vld [vmem:[#allocation2 + $0x348] sm:$0xff]  ;;  %v2426_v19 = vcombine.low %v172_v7, %v176_v8  ;;  %v119_v2 = vld [vmem:[#allocation2 + $0x1d8] sm:$0xff] }
  0x32   :  { %890 = vmatprep.subr.bf16.mxu0 %v2331_v44  ;;  %933 = vmatprep.subr.bf16.mxu1 %v2333_v45  ;;  %v168_v16 = vld [vmem:[#allocation2 + $0x360] sm:$0xff]  ;;  %v169_v18 = vld [vmem:[#allocation2 + $0x368] sm:$0xff]  ;;  %v2428_v20 = vcombine.low %v173_v9, %v177_v10  ;;  %v2375_v7 = vcombine.high %v118_v0, %v122_v1  ;;  %v110_v9 = vld [vmem:[#allocation2 + $0x190] sm:$0xff] }
  0x33   :  { %v2419_v21 = vcombine.high %v164_v15, %v168_v16  ;;  %v2421_v22 = vcombine.high %v165_v17, %v169_v18  ;;  %v156_v23 = vld [vmem:[#allocation2 + $0x300] sm:$0xff]  ;;  %v157_v25 = vld [vmem:[#allocation2 + $0x308] sm:$0xff]  ;;  %v2418_v27 = vcombine.low %v164_v15, %v168_v16  ;;  %v2420_v28 = vcombine.low %v165_v17, %v169_v18  ;;  %v114_v10 = vld [vmem:[#allocation2 + $0x1b0] sm:$0xff] }
  0x34   :  { %v160_v24 = vld [vmem:[#allocation2 + $0x320] sm:$0xff]  ;;  %v161_v26 = vld [vmem:[#allocation2 + $0x328] sm:$0xff]  ;;  %v2367_v15 = vcombine.high %v110_v9, %v114_v10  ;;  %v102_v17 = vld [vmem:[#allocation2 + $0x150] sm:$0xff] }
  0x35   :  { %891 = vmatpush1.bf16.msra.mxu0 %v2330_v50  ;;  %934 = vmatpush1.bf16.msra.mxu1 %v2332_v51  ;;  %v2411_v29 = vcombine.high %v156_v23, %v160_v24  ;;  %v2413_v30 = vcombine.high %v157_v25, %v161_v26  ;;  %v148_v31 = vld [vmem:[#allocation2 + $0x2c0] sm:$0xff]  ;;  %v149_v33 = vld [vmem:[#allocation2 + $0x2c8] sm:$0xff]  ;;  %v2410_v35 = vcombine.low %v156_v23, %v160_v24  ;;  %v106_v18 = vld [vmem:[#allocation2 + $0x170] sm:$0xff] }
  0x36   :  { %892 = vmatprep.subr.bf16.mxu0 %v2323_v52  ;;  %935 = vmatprep.subr.bf16.mxu1 %v2325_v53  ;;  %v152_v32 = vld [vmem:[#allocation2 + $0x2e0] sm:$0xff]  ;;  %v153_v34 = vld [vmem:[#allocation2 + $0x2e8] sm:$0xff]  ;;  %v2412_v36 = vcombine.low %v157_v25, %v161_v26  ;;  %v2359_v23 = vcombine.high %v102_v17, %v106_v18  ;;  %v94_v25 = vld [vmem:[#allocation2 + $0x110] sm:$0xff] }
  0x37   :  { %v2403_v37 = vcombine.high %v148_v31, %v152_v32  ;;  %v2405_v38 = vcombine.high %v149_v33, %v153_v34  ;;  %v140_v39 = vld [vmem:[#allocation2 + $0x280] sm:$0xff]  ;;  %v141_v41 = vld [vmem:[#allocation2 + $0x288] sm:$0xff]  ;;  %v2402_v43 = vcombine.low %v148_v31, %v152_v32  ;;  %v2404_v44 = vcombine.low %v149_v33, %v153_v34  ;;  %v98_v26 = vld [vmem:[#allocation2 + $0x130] sm:$0xff] }
  0x38   :  { %v144_v40 = vld [vmem:[#allocation2 + $0x2a0] sm:$0xff]  ;;  %v145_v42 = vld [vmem:[#allocation2 + $0x2a8] sm:$0xff]  ;;  %v2351_v31 = vcombine.high %v94_v25, %v98_v26  ;;  %v86_v33 = vld [vmem:[#allocation2 + $0xd0] sm:$0xff] }
  0x39   :  { %893 = vmatpush1.bf16.msra.mxu0 %v2322_v59  ;;  %936 = vmatpush1.bf16.msra.mxu1 %v2324_v60  ;;  %v2395_v45 = vcombine.high %v140_v39, %v144_v40  ;;  %v2397_v46 = vcombine.high %v141_v41, %v145_v42  ;;  %v132_v47 = vld [vmem:[#allocation2 + $0x240] sm:$0xff]  ;;  %v133_v49 = vld [vmem:[#allocation2 + $0x248] sm:$0xff]  ;;  %v2394_v51 = vcombine.low %v140_v39, %v144_v40  ;;  %v90_v34 = vld [vmem:[#allocation2 + $0xf0] sm:$0xff] }
  0x3a   :  { %894 = vmatprep.subr.bf16.mxu0 %v2315_v61  ;;  %937 = vmatprep.subr.bf16.mxu1 %v2317_v62  ;;  %v136_v48 = vld [vmem:[#allocation2 + $0x260] sm:$0xff]  ;;  %v137_v50 = vld [vmem:[#allocation2 + $0x268] sm:$0xff]  ;;  %v2396_v52 = vcombine.low %v141_v41, %v145_v42  ;;  %v2343_v39 = vcombine.high %v86_v33, %v90_v34  ;;  %v78_v40 = vld [vmem:[#allocation2 + $0x90] sm:$0xff] }
  0x3b   :  { %v2387_v53 = vcombine.high %v132_v47, %v136_v48  ;;  %v2389_v54 = vcombine.high %v133_v49, %v137_v50  ;;  %v124_v55 = vld [vmem:[#allocation2 + $0x200] sm:$0xff]  ;;  %v125_v58 = vld [vmem:[#allocation2 + $0x208] sm:$0xff]  ;;  %v2386_v60 = vcombine.low %v132_v47, %v136_v48  ;;  %v2388_v61 = vcombine.low %v133_v49, %v137_v50  ;;  %v82_v41 = vld [vmem:[#allocation2 + $0xb0] sm:$0xff] }
  0x3c   :  { %v128_v57 = vld [vmem:[#allocation2 + $0x220] sm:$0xff]  ;;  %v129_v59 = vld [vmem:[#allocation2 + $0x228] sm:$0xff]  ;;  %v79_v42 = vld [vmem:[#allocation2 + $0x98] sm:$0xff]  ;;  %v2335_v48 = vcombine.high %v78_v40, %v82_v41 }
  0x3d   :  { %895 = vmatpush1.bf16.msra.mxu0 %v2314_v3  ;;  %938 = vmatpush1.bf16.msra.mxu1 %v2316_v4  ;;  %v2379_v62 = vcombine.high %v124_v55, %v128_v57  ;;  %v2381_v63 = vcombine.high %v125_v58, %v129_v59  ;;  %v123_v3 = vld [vmem:[#allocation2 + $0x1f8] sm:$0xff]  ;;  %v2378_v4 = vcombine.low %v124_v55, %v128_v57 }
  0x3e   :  { %896 = vmatprep.subr.bf16.mxu0 %v2435_v5  ;;  %939 = vmatprep.subr.bf16.mxu1 %v2437_v6  ;;  %v2380_v5 = vcombine.low %v125_v58, %v129_v59  ;;  %v2958_v6 = vld [vmem:[%s3063_s0] ss:$8 sps:$4 sm:$0xff]   ;;  %v2377_v8 = vcombine.high %v119_v2, %v123_v3  ;;  %v71_v49 = vld [vmem:[#allocation2 + $0x58] sm:$0xff] }
  0x3f   :  { %v75_v50 = vld [vmem:[#allocation2 + $0x78] sm:$0xff] }
  0x40   :  { %v63_v58 = vld [vmem:[#allocation2 + $0x18] sm:$0xff] }
  0x41   :  { %897 = vmatpush2.bf16.msra.mxu0 %v2434_v11  ;;  %940 = vmatpush2.bf16.msra.mxu1 %v2436_v12  ;;  %v111_v11 = vld [vmem:[#allocation2 + $0x198] sm:$0xff] }
  0x42   :  { %898 = vmatprep.subr.bf16.mxu0 %v2427_v13  ;;  %941 = vmatprep.subr.bf16.mxu1 %v2429_v14  ;;  %v115_v12 = vld [vmem:[#allocation2 + $0x1b8] sm:$0xff]  ;;  %v2374_v13 = vcombine.low %v118_v0, %v122_v1  ;;  %v2376_v14 = vcombine.low %v119_v2, %v123_v3  ;;  %v2328_v0 = vcombine.low %v71_v49, %v75_v50 }
  0x43   :  { %v2369_v16 = vcombine.high %v111_v11, %v115_v12  ;;  %v67_v59 = vld [vmem:[#allocation2 + $0x38] sm:$0xff] }
  0x44   :  { %v183_v2 = vld [vmem:[#allocation2 + $0x3d8] sm:$0xff] }
  0x45   :  { %899 = vmatpush2.bf16.msra.mxu0 %v2426_v19  ;;  %942 = vmatpush2.bf16.msra.mxu1 %v2428_v20  ;;  %v103_v19 = vld [vmem:[#allocation2 + $0x158] sm:$0xff] }
  0x46   :  { %900 = vmatprep.subr.bf16.mxu0 %v2419_v21  ;;  %943 = vmatprep.subr.bf16.mxu1 %v2421_v22  ;;  %v107_v20 = vld [vmem:[#allocation2 + $0x178] sm:$0xff]  ;;  %v2366_v21 = vcombine.low %v110_v9, %v114_v10  ;;  %v2368_v22 = vcombine.low %v111_v11, %v115_v12  ;;  %v2320_v9 = vcombine.low %v63_v58, %v67_v59 }
  0x47   :  { %v2361_v24 = vcombine.high %v103_v19, %v107_v20  ;;  %v187_v3 = vld [vmem:[#allocation2 + $0x3f8] sm:$0xff] }
  0x48   :  { %v175_v11 = vld [vmem:[#allocation2 + $0x398] sm:$0xff] }
  0x49   :  { %901 = vmatpush2.bf16.msra.mxu0 %v2418_v27  ;;  %944 = vmatpush2.bf16.msra.mxu1 %v2420_v28  ;;  %v95_v27 = vld [vmem:[#allocation2 + $0x118] sm:$0xff] }
  0x4a   :  { %902 = vmatprep.subr.bf16.mxu0 %v2411_v29  ;;  %945 = vmatprep.subr.bf16.mxu1 %v2413_v30  ;;  %v99_v28 = vld [vmem:[#allocation2 + $0x138] sm:$0xff]  ;;  %v2358_v29 = vcombine.low %v102_v17, %v106_v18  ;;  %v2360_v30 = vcombine.low %v103_v19, %v107_v20  ;;  %v2440_v17 = vcombine.low %v183_v2, %v187_v3 }
  0x4b   :  { %v2353_v32 = vcombine.high %v95_v27, %v99_v28  ;;  %v179_v12 = vld [vmem:[#allocation2 + $0x3b8] sm:$0xff] }
  0x4c   :  { %v167_v19 = vld [vmem:[#allocation2 + $0x358] sm:$0xff] }
  0x4d   :  { %903 = vmatpush2.bf16.msra.mxu0 %v2410_v35  ;;  %946 = vmatpush2.bf16.msra.mxu1 %v2412_v36  ;;  %v87_v35 = vld [vmem:[#allocation2 + $0xd8] sm:$0xff] }
  0x4e   :  { %904 = vmatprep.subr.bf16.mxu0 %v2403_v37  ;;  %947 = vmatprep.subr.bf16.mxu1 %v2405_v38  ;;  %v91_v36 = vld [vmem:[#allocation2 + $0xf8] sm:$0xff]  ;;  %v2350_v37 = vcombine.low %v94_v25, %v98_v26  ;;  %v2352_v38 = vcombine.low %v95_v27, %v99_v28  ;;  %v2432_v25 = vcombine.low %v175_v11, %v179_v12 }
  0x4f   :  { %v2344_v47 = vcombine.low %v87_v35, %v91_v36  ;;  %v171_v20 = vld [vmem:[#allocation2 + $0x378] sm:$0xff] }
  0x50   :  { %v159_v27 = vld [vmem:[#allocation2 + $0x318] sm:$0xff] }
  0x51   :  { %905 = vmatpush2.bf16.msra.mxu0 %v2402_v43  ;;  %948 = vmatpush2.bf16.msra.mxu1 %v2404_v44  ;;  %v83_v43 = vld [vmem:[#allocation2 + $0xb8] sm:$0xff]  ;;  %v2342_v44 = vcombine.low %v86_v33, %v90_v34  ;;  %v2424_v33 = vcombine.low %v167_v19, %v171_v20 }
  0x52   :  { %906 = vmatprep.subr.bf16.mxu0 %v2395_v45  ;;  %949 = vmatprep.subr.bf16.mxu1 %v2397_v46  ;;  %v70_v45 = vld [vmem:[#allocation2 + $0x50] sm:$0xff]  ;;  %v2336_v55 = vcombine.low %v79_v42, %v83_v43  ;;  %v163_v28 = vld [vmem:[#allocation2 + $0x338] sm:$0xff] }
  0x53   :  { %v74_v46 = vld [vmem:[#allocation2 + $0x70] sm:$0xff] }
  0x54   :  { %v2327_v57 = vcombine.high %v70_v45, %v74_v46 }
  0x55   :  { %907 = vmatpush2.bf16.msra.mxu0 %v2394_v51  ;;  %950 = vmatpush2.bf16.msra.mxu1 %v2396_v52  ;;  %v2337_v51 = vcombine.high %v79_v42, %v83_v43  ;;  %v2334_v52 = vcombine.low %v78_v40, %v82_v41  ;;  %v146_v40 = vld [vmem:[#allocation2 + $0x2b0] sm:$0xff]  ;;  %v143_v42 = vld [vmem:[#allocation2 + $0x298] sm:$0xff] }
  0x56   :  { %908 = vmatprep.subr.bf16.mxu0 %v2387_v53  ;;  %951 = vmatprep.subr.bf16.mxu1 %v2389_v54  ;;  %v62_v53 = vld [vmem:[#allocation2 + $0x10] sm:$0xff]  ;;  %v147_v43 = vld [vmem:[#allocation2 + $0x2b8] sm:$0xff] }
  0x57   :  { %v66_v54 = vld [vmem:[#allocation2 + $0x30] sm:$0xff] }
  0x58   :  { %v2319_v1 = vcombine.high %v62_v53, %v66_v54 }
  0x59   :  { %909 = vmatpush2.bf16.msra.mxu0 %v2386_v60  ;;  %952 = vmatpush2.bf16.msra.mxu1 %v2388_v61  ;;  %v2329_v60 = vcombine.high %v71_v49, %v75_v50  ;;  %v2326_v61 = vcombine.low %v70_v45, %v74_v46  ;;  %v134_v46 = vld [vmem:[#allocation2 + $0x250] sm:$0xff]  ;;  %v2401_v50 = vcombine.high %v143_v42, %v147_v43 }
  0x5a   :  { %910 = vmatprep.subr.bf16.mxu0 %v2379_v62  ;;  %953 = vmatprep.subr.bf16.mxu1 %v2381_v63  ;;  %v182_v62 = vld [vmem:[#allocation2 + $0x3d0] sm:$0xff] }
  0x5b   :  { %v186_v63 = vld [vmem:[#allocation2 + $0x3f0] sm:$0xff] }
  0x5c   :  { %v2439_v10 = vcombine.high %v182_v62, %v186_v63 }
  0x5d   :  { %911 = vmatpush2.bf16.msra.mxu0 %v2378_v4  ;;  %954 = vmatpush2.bf16.msra.mxu1 %v2380_v5  ;;  %v2321_v4 = vcombine.high %v63_v58, %v67_v59  ;;  %v2318_v5 = vcombine.low %v62_v53, %v66_v54  ;;  %v2400_v54 = vcombine.low %v143_v42, %v147_v43  ;;  %v126_v58 = vld [vmem:[#allocation2 + $0x210] sm:$0xff]  ;;  %v2688_v42 = vld [vmem:[#allocation4 + $0x1e0] ss:$8 sps:$4 sm:$0xff]  }
  0x5e   :  { %966 = vmatprep.subr.bf16.mxu0 %v2375_v7  ;;  %1009 = vmatprep.subr.bf16.mxu1 %v2377_v8  ;;  %v174_v7 = vld [vmem:[#allocation2 + $0x390] sm:$0xff] }
  0x5f   :  { %v178_v8 = vld [vmem:[#allocation2 + $0x3b0] sm:$0xff] }
  0x60   :  { %913 = vmatmul.mubr.bf16.vlgmr.msra.gmra.mxu0 %v2958_v6  ;;  %956 = vmatmul.mubr.bf16.vlgmr.msra.gmra.mxu1 %v2958_v6  ;;  %v2431_v18 = vcombine.high %v174_v7, %v178_v8  ;;  %v130_v59 = vld [vmem:[#allocation2 + $0x230] sm:$0xff] }
  0x61   :  { %967 = vmatpush1.bf16.msra.mxu0 %v2374_v13  ;;  %1010 = vmatpush1.bf16.msra.mxu1 %v2376_v14  ;;  %v2441_v13 = vcombine.high %v183_v2, %v187_v3  ;;  %v2438_v14 = vcombine.low %v182_v62, %v186_v63  ;;  %v2382_v2 = vcombine.low %v126_v58, %v130_v59  ;;  %v2693_v43 = vld [vmem:[#allocation4 + $0xd4] ss:$8 sps:$4 sm:$0xff]  }
  0x62   :  { %968 = vmatprep.subr.bf16.mxu0 %v2367_v15  ;;  %1011 = vmatprep.subr.bf16.mxu1 %v2369_v16  ;;  %v166_v15 = vld [vmem:[#allocation2 + $0x350] sm:$0xff] }
  0x63   :  { %998 = vmatprep.mubr.bf16.mxu0 %v2951_v56  ;;  %1041 = vmatprep.mubr.bf16.mxu1 %v2951_v56  ;;  %v2345_v56 = vcombine.high %v87_v35, %v91_v36  ;;  %v170_v16 = vld [vmem:[#allocation2 + $0x370] sm:$0xff]  ;;  %v151_v35 = vld [vmem:[#allocation2 + $0x2d8] sm:$0xff] }
  0x64   :  { %v2423_v26 = vcombine.high %v166_v15, %v170_v16  ;;  %v155_v36 = vld [vmem:[#allocation2 + $0x2f8] sm:$0xff] }
  0x65   :  { %969 = vmatpush1.bf16.msra.mxu0 %v2366_v21  ;;  %1012 = vmatpush1.bf16.msra.mxu1 %v2368_v22  ;;  %v2433_v21 = vcombine.high %v175_v11, %v179_v12  ;;  %v2430_v22 = vcombine.low %v174_v7, %v178_v8  ;;  %v2631_v7 = vld [vmem:[#allocation4 + $0x70] ss:$8 sps:$4 sm:$0xff]   ;;  %v2637_v11 = vld [vmem:[#allocation4 + $0x60] ss:$8 sps:$4 sm:$0xff]  }
  0x66   :  { %970 = vmatprep.subr.bf16.mxu0 %v2359_v23  ;;  %1013 = vmatprep.subr.bf16.mxu1 %v2361_v24  ;;  %v158_v23 = vld [vmem:[#allocation2 + $0x310] sm:$0xff]  ;;  %v2640_v12 = vld [vmem:[#allocation4 + $0x160] ss:$8 sps:$4 sm:$0xff]  }
  0x67   :  { %v162_v24 = vld [vmem:[#allocation2 + $0x330] sm:$0xff] }
  0x68   :  { %v2415_v34 = vcombine.high %v158_v23, %v162_v24  ;;  %v2634_v8 = vld [vmem:[#allocation4 + $0x170] ss:$8 sps:$4 sm:$0xff]  }
  0x69   :  { %971 = vmatpush1.bf16.msra.mxu0 %v2358_v29  ;;  %1014 = vmatpush1.bf16.msra.mxu1 %v2360_v30  ;;  %v2425_v29 = vcombine.high %v167_v19, %v171_v20  ;;  %v2422_v30 = vcombine.low %v166_v15, %v170_v16  ;;  %v2643_v15 = vld [vmem:[#allocation4 + $0x50] ss:$8 sps:$4 sm:$0xff]   ;;  %v2649_v19 = vld [vmem:[#allocation4 + $0x40] ss:$8 sps:$4 sm:$0xff]   ;;  %v2657_v20 = vld [vmem:[#allocation4 + $0x34] ss:$8 sps:$4 sm:$0xff]  }
  0x6a   :  { %972 = vmatprep.subr.bf16.mxu0 %v2351_v31  ;;  %1015 = vmatprep.subr.bf16.mxu1 %v2353_v32  ;;  %v150_v31 = vld [vmem:[#allocation2 + $0x2d0] sm:$0xff] }
  0x6b   :  { %v154_v32 = vld [vmem:[#allocation2 + $0x2f0] sm:$0xff] }
  0x6c   :  { %v2407_v41 = vcombine.high %v150_v31, %v154_v32  ;;  %v2406_v45 = vcombine.low %v150_v31, %v154_v32  ;;  %v2646_v16 = vld [vmem:[#allocation4 + $0x150] ss:$8 sps:$4 sm:$0xff]   ;;  %v2675_v32 = vld [vmem:[#allocation4 + $0x4] ss:$8 sps:$4 sm:$0xff]  }
  0x6d   :  { %973 = vmatpush1.bf16.msra.mxu0 %v2350_v37  ;;  %1016 = vmatpush1.bf16.msra.mxu1 %v2352_v38  ;;  %v2417_v37 = vcombine.high %v159_v27, %v163_v28  ;;  %v2414_v38 = vcombine.low %v158_v23, %v162_v24  ;;  %v2658_v23 = vld [vmem:[#allocation4 + $0x130] ss:$8 sps:$4 sm:$0xff]   ;;  %v2663_v24 = vld [vmem:[#allocation4 + $0x24] ss:$8 sps:$4 sm:$0xff]  }
  0x6e   :  { %974 = vmatprep.subr.bf16.mxu0 %v2343_v39  ;;  %1017 = vmatprep.subr.bf16.mxu1 %v2345_v56  ;;  %v142_v39 = vld [vmem:[#allocation2 + $0x290] sm:$0xff]  ;;  %v2416_v56 = vcombine.low %v159_v27, %v163_v28  ;;  %v2664_v27 = vld [vmem:[#allocation4 + $0x120] ss:$8 sps:$4 sm:$0xff]  }
  0x6f   :  { %v2399_v49 = vcombine.high %v142_v39, %v146_v40  ;;  %v2398_v53 = vcombine.low %v142_v39, %v146_v40  ;;  %v2669_v28 = vld [vmem:[#allocation4 + $0x14] ss:$8 sps:$4 sm:$0xff]   ;;  %v2670_v31 = vld [vmem:[#allocation4 + $0x110] ss:$8 sps:$4 sm:$0xff]   ;;  %v2687_v40 = vld [vmem:[#allocation4 + $0xe4] ss:$8 sps:$4 sm:$0xff]  }
  0x70   :  { %v2682_v39 = vld [vmem:[#allocation4 + $0x1f0] ss:$8 sps:$4 sm:$0xff]  }
  0x71   :  { %975 = vmatpush1.bf16.msra.mxu0 %v2342_v44  ;;  %1018 = vmatpush1.bf16.msra.mxu1 %v2344_v47  ;;  %v2409_v44 = vcombine.high %v151_v35, %v155_v36  ;;  %v138_v47 = vld [vmem:[#allocation2 + $0x270] sm:$0xff] }
  0x72   :  { %976 = vmatprep.subr.bf16.mxu0 %v2335_v48  ;;  %1019 = vmatprep.subr.bf16.mxu1 %v2337_v51  ;;  %v2408_v48 = vcombine.low %v151_v35, %v155_v36  ;;  %v135_v51 = vld [vmem:[#allocation2 + $0x258] sm:$0xff]  ;;  %v2390_v62 = vcombine.low %v134_v46, %v138_v47  ;;  %v2676_v35 = vld [vmem:[#allocation4 + $0x100] ss:$8 sps:$4 sm:$0xff]  }
  0x73   :  { %v2681_v36 = vld [vmem:[#allocation4 + $0xf4] ss:$8 sps:$4 sm:$0xff]  }
  0x75   :  { %977 = vmatpush1.bf16.msra.mxu0 %v2334_v52  ;;  %1020 = vmatpush1.bf16.msra.mxu1 %v2336_v55  ;;  %v139_v52 = vld [vmem:[#allocation2 + $0x278] sm:$0xff]  ;;  %v2391_v55 = vcombine.high %v134_v46, %v138_v47  ;;  %v2699_v47 = vld [vmem:[#allocation4 + $0xc4] ss:$8 sps:$4 sm:$0xff]  }
  0x76   :  { %978 = vmatprep.subr.bf16.mxu0 %v2327_v57  ;;  %1021 = vmatprep.subr.bf16.mxu1 %v2329_v60  ;;  %v2393_v57 = vcombine.high %v135_v51, %v139_v52  ;;  %v127_v60 = vld [vmem:[#allocation2 + $0x218] sm:$0xff]  ;;  %v2392_v63 = vcombine.low %v135_v51, %v139_v52 }
  0x77   :  { %v2694_v46 = vld [vmem:[#allocation4 + $0x1d0] ss:$8 sps:$4 sm:$0xff]   ;;  %v2705_v51 = vld [vmem:[#allocation4 + $0xb4] ss:$8 sps:$4 sm:$0xff]  }
  0x78   :  { %v2708_v52 = vld [vmem:[#allocation4 + $0x1b4] ss:$8 sps:$4 sm:$0xff]  }
  0x79   :  { %979 = vmatpush1.bf16.msra.mxu0 %v2326_v61  ;;  %1022 = vmatpush1.bf16.msra.mxu1 %v2328_v0  ;;  %v131_v61 = vld [vmem:[#allocation2 + $0x238] sm:$0xff]  ;;  %v2383_v0 = vcombine.high %v126_v58, %v130_v59  ;;  %v2709_v58 = vld [vmem:[#allocation4 + $0xa0] ss:$8 sps:$4 sm:$0xff]  }
  0x7a   :  { %980 = vmatprep.subr.bf16.mxu0 %v2319_v1  ;;  %1023 = vmatprep.subr.bf16.mxu1 %v2321_v4  ;;  %v2385_v1 = vcombine.high %v127_v60, %v131_v61  ;;  %v2384_v3 = vcombine.low %v127_v60, %v131_v61  ;;  %v2633_v4 = vld [vmem:[#allocation4 + $0x74] ss:$8 sps:$4 sm:$0xff]   ;;  %v2712_v59 = vld [vmem:[#allocation4 + $0x1a0] ss:$8 sps:$4 sm:$0xff]  }
  0x7b   :  { %v2717_v60 = vld [vmem:[#allocation4 + $0x94] ss:$8 sps:$4 sm:$0xff]  }
  0x7c   :  { %v2720_v61 = vld [vmem:[#allocation4 + $0x194] ss:$8 sps:$4 sm:$0xff]  }
  0x7d   :  { %981 = vmatpush1.bf16.msra.mxu0 %v2318_v5  ;;  %1024 = vmatpush1.bf16.msra.mxu1 %v2320_v9  ;;  %v2636_v5 = vld [vmem:[#allocation4 + $0x174] ss:$8 sps:$4 sm:$0xff]   ;;  %v2639_v9 = vld [vmem:[#allocation4 + $0x64] ss:$8 sps:$4 sm:$0xff]  }
  0x7e   :  { %982 = vmatprep.subr.bf16.mxu0 %v2439_v10  ;;  %1025 = vmatprep.subr.bf16.mxu1 %v2441_v13  ;;  %v2642_v10 = vld [vmem:[#allocation4 + $0x164] ss:$8 sps:$4 sm:$0xff]   ;;  %v2645_v13 = vld [vmem:[#allocation4 + $0x54] ss:$8 sps:$4 sm:$0xff]  }
  0x81   :  { %983 = vmatpush2.bf16.msra.mxu0 %v2438_v14  ;;  %1026 = vmatpush2.bf16.msra.mxu1 %v2440_v17  ;;  %v2648_v14 = vld [vmem:[#allocation4 + $0x154] ss:$8 sps:$4 sm:$0xff]   ;;  %v2651_v17 = vld [vmem:[#allocation4 + $0x44] ss:$8 sps:$4 sm:$0xff]  }
  0x82   :  { %984 = vmatprep.subr.bf16.mxu0 %v2431_v18  ;;  %1027 = vmatprep.subr.bf16.mxu1 %v2433_v21  ;;  %v2654_v18 = vld [vmem:[#allocation4 + $0x144] ss:$8 sps:$4 sm:$0xff]   ;;  %v2660_v21 = vld [vmem:[#allocation4 + $0x134] ss:$8 sps:$4 sm:$0xff]  }
  0x85   :  { %985 = vmatpush2.bf16.msra.mxu0 %v2430_v22  ;;  %1028 = vmatpush2.bf16.msra.mxu1 %v2432_v25  ;;  %v2655_v22 = vld [vmem:[#allocation4 + $0x30] ss:$8 sps:$4 sm:$0xff]   ;;  %v2666_v25 = vld [vmem:[#allocation4 + $0x124] ss:$8 sps:$4 sm:$0xff]  }
  0x86   :  { %986 = vmatprep.subr.bf16.mxu0 %v2423_v26  ;;  %1029 = vmatprep.subr.bf16.mxu1 %v2425_v29  ;;  %v2661_v26 = vld [vmem:[#allocation4 + $0x20] ss:$8 sps:$4 sm:$0xff]   ;;  %v2672_v29 = vld [vmem:[#allocation4 + $0x114] ss:$8 sps:$4 sm:$0xff]  }
  0x89   :  { %987 = vmatpush2.bf16.msra.mxu0 %v2422_v30  ;;  %1030 = vmatpush2.bf16.msra.mxu1 %v2424_v33  ;;  %v2667_v30 = vld [vmem:[#allocation4 + $0x10] ss:$8 sps:$4 sm:$0xff]   ;;  %v2678_v33 = vld [vmem:[#allocation4 + $0x104] ss:$8 sps:$4 sm:$0xff]  }
  0x8a   :  { %988 = vmatprep.subr.bf16.mxu0 %v2415_v34  ;;  %1031 = vmatprep.subr.bf16.mxu1 %v2417_v37  ;;  %v2673_v34 = vld [vmem:[#allocation4] ss:$8 sps:$4 sm:$0xff]   ;;  %v2684_v37 = vld [vmem:[#allocation4 + $0x1f4] ss:$8 sps:$4 sm:$0xff]  }
  0x8d   :  { %989 = vmatpush2.bf16.msra.mxu0 %v2414_v38  ;;  %1032 = vmatpush2.bf16.msra.mxu1 %v2416_v56  ;;  %v2679_v38 = vld [vmem:[#allocation4 + $0xf0] ss:$8 sps:$4 sm:$0xff]   ;;  %v2690_v56 = vld [vmem:[#allocation4 + $0x1e4] ss:$8 sps:$4 sm:$0xff]  }
  0x8e   :  { %990 = vmatprep.subr.bf16.mxu0 %v2407_v41  ;;  %1033 = vmatprep.subr.bf16.mxu1 %v2409_v44  ;;  %v2685_v41 = vld [vmem:[#allocation4 + $0xe0] ss:$8 sps:$4 sm:$0xff]   ;;  %v2696_v44 = vld [vmem:[#allocation4 + $0x1d4] ss:$8 sps:$4 sm:$0xff]  }
  0x91   :  { %991 = vmatpush2.bf16.msra.mxu0 %v2406_v45  ;;  %1034 = vmatpush2.bf16.msra.mxu1 %v2408_v48  ;;  %v2691_v45 = vld [vmem:[#allocation4 + $0xd0] ss:$8 sps:$4 sm:$0xff]   ;;  %v2702_v48 = vld [vmem:[#allocation4 + $0x1c4] ss:$8 sps:$4 sm:$0xff]  }
  0x92   :  { %992 = vmatprep.subr.bf16.mxu0 %v2399_v49  ;;  %1035 = vmatprep.subr.bf16.mxu1 %v2401_v50  ;;  %v2697_v49 = vld [vmem:[#allocation4 + $0xc0] ss:$8 sps:$4 sm:$0xff]  }
  0x93   :  { %v2700_v50 = vld [vmem:[#allocation4 + $0x1c0] ss:$8 sps:$4 sm:$0xff]  }
  0x95   :  { %993 = vmatpush2.bf16.msra.mxu0 %v2398_v53  ;;  %1036 = vmatpush2.bf16.msra.mxu1 %v2400_v54  ;;  %v2703_v53 = vld [vmem:[#allocation4 + $0xb0] ss:$8 sps:$4 sm:$0xff]  }
  0x96   :  { %994 = vmatprep.subr.bf16.mxu0 %v2391_v55  ;;  %1037 = vmatprep.subr.bf16.mxu1 %v2393_v57  ;;  %v2706_v54 = vld [vmem:[#allocation4 + $0x1b0] ss:$8 sps:$4 sm:$0xff]   ;;  %v2711_v55 = vld [vmem:[#allocation4 + $0xa4] ss:$8 sps:$4 sm:$0xff]  }
  0x97   :  { %v2714_v57 = vld [vmem:[#allocation4 + $0x1a4] ss:$8 sps:$4 sm:$0xff]  }
  0x99   :  { %995 = vmatpush2.bf16.msra.mxu0 %v2390_v62  ;;  %1038 = vmatpush2.bf16.msra.mxu1 %v2392_v63  ;;  %v2715_v62 = vld [vmem:[#allocation4 + $0x90] ss:$8 sps:$4 sm:$0xff]  }
  0x9a   :  { %996 = vmatprep.subr.bf16.mxu0 %v2383_v0  ;;  %1039 = vmatprep.subr.bf16.mxu1 %v2385_v1  ;;  %v2718_v63 = vld [vmem:[#allocation4 + $0x190] ss:$8 sps:$4 sm:$0xff]   ;;  %v2723_v0 = vld [vmem:[#allocation4 + $0x84] ss:$8 sps:$4 sm:$0xff]  }
  0x9b   :  { %v2726_v1 = vld [vmem:[#allocation4 + $0x184] ss:$8 sps:$4 sm:$0xff]  }
  0x9d   :  { %997 = vmatpush2.bf16.msra.mxu0 %v2382_v2  ;;  %1040 = vmatpush2.bf16.msra.mxu1 %v2384_v3  ;;  %v2721_v2 = vld [vmem:[#allocation4 + $0x80] ss:$8 sps:$4 sm:$0xff]  }
  0x9e   :  { %1856 = vmatprep.subr.bf16.mxu0 %v2633_v4  ;;  %1899 = vmatprep.subr.bf16.mxu1 %v2636_v5  ;;  %v2724_v3 = vld [vmem:[#allocation4 + $0x180] ss:$8 sps:$4 sm:$0xff]   ;;  %v2729_v4 = vld [vmem:[#allocation4 + $0x274] ss:$8 sps:$4 sm:$0xff]  }
  0x9f   :  { %v2732_v5 = vld [vmem:[#allocation4 + $0x374] ss:$8 sps:$4 sm:$0xff]  }
  0xa0   :  { %999 = vmatmul.mubr.bf16.vlgmr.msra.gmra.mxu0 %v2958_v6  ;;  %1042 = vmatmul.mubr.bf16.vlgmr.msra.gmra.mxu1 %v2958_v6  ;;  %v2652_v6 = vld [vmem:[#allocation4 + $0x140] ss:$8 sps:$4 sm:$0xff]  }
  0xa1   :  { %1857 = vmatpush1.bf16.msra.mxu0 %v2631_v7  ;;  %1900 = vmatpush1.bf16.msra.mxu1 %v2634_v8  ;;  %v190_v7 = vlaneseq }
  0xa2   :  { %1858 = vmatprep.subr.bf16.mxu0 %v2639_v9  ;;  %1901 = vmatprep.subr.bf16.mxu1 %v2642_v10 }
  0xa3   :  { %v2966_v8 = vshrl.u32 %v190_v7, 7  ;;  %v2766_v7 = vld [vmem:[#allocation4 + $0x310] ss:$8 sps:$4 sm:$0xff]  }
  0xa5   :  { %1859 = vmatpush1.bf16.msra.mxu0 %v2637_v11  ;;  %1902 = vmatpush1.bf16.msra.mxu1 %v2640_v12  ;;  %v200_v9 = vsub.s32 2, %v2966_v8  ;;  %v196_v10 = vsub.s32 1, %v2966_v8  ;;  %v2973_v11 = vld [vmem:[%s3065_s2] sm:$0xff]  ;;  %v192_v12 = vsub.s32 0, %v2966_v8 }
  0xa6   :  { %1860 = vmatprep.subr.bf16.mxu0 %v2645_v13  ;;  %1903 = vmatprep.subr.bf16.mxu1 %v2648_v14  ;;  %v204_v13 = vsub.s32 3, %v2966_v8 }
  0xa9   :  { %1861 = vmatpush1.bf16.msra.mxu0 %v2643_v15  ;;  %1904 = vmatpush1.bf16.msra.mxu1 %v2646_v16  ;;  %v201_v15 = vrot.slane %v2973_v11, %v200_v9  ;;  %v2771_v9 = vld [vmem:[#allocation4 + $0x204] ss:$8 sps:$4 sm:$0xff]  }
  0xaa   :  { %1862 = vmatprep.subr.bf16.mxu0 %v2651_v17  ;;  %1905 = vmatprep.subr.bf16.mxu1 %v2654_v18  ;;  %v197_v17 = vrot.slane %v2973_v11, %v196_v10  ;;  %v193_v18 = vrot.slane %v2973_v11, %v192_v12 }
  0xad   :  { %1863 = vmatpush1.bf16.msra.mxu0 %v2649_v19  ;;  %1906 = vmatpush1.bf16.msra.mxu1 %v2652_v6  ;;  %v205_v6 = vrot.slane %v2973_v11, %v204_v13  ;;  %v2774_v13 = vld [vmem:[#allocation4 + $0x304] ss:$8 sps:$4 sm:$0xff]  }
  0xae   :  { %1864 = vmatprep.subr.bf16.mxu0 %v2657_v20  ;;  %1907 = vmatprep.subr.bf16.mxu1 %v2660_v21 }
  0xb1   :  { %1865 = vmatpush1.bf16.msra.mxu0 %v2655_v22  ;;  %1908 = vmatpush1.bf16.msra.mxu1 %v2658_v23 }
  0xb2   :  { %1866 = vmatprep.subr.bf16.mxu0 %v2663_v24  ;;  %1909 = vmatprep.subr.bf16.mxu1 %v2666_v25 }
  0xb5   :  { %1867 = vmatpush1.bf16.msra.mxu0 %v2661_v26  ;;  %1910 = vmatpush1.bf16.msra.mxu1 %v2664_v27 }
  0xb6   :  { %1868 = vmatprep.subr.bf16.mxu0 %v2669_v28  ;;  %1911 = vmatprep.subr.bf16.mxu1 %v2672_v29 }
  0xb9   :  { %1869 = vmatpush1.bf16.msra.mxu0 %v2667_v30  ;;  %1912 = vmatpush1.bf16.msra.mxu1 %v2670_v31 }
  0xba   :  { %1870 = vmatprep.subr.bf16.mxu0 %v2675_v32  ;;  %1913 = vmatprep.subr.bf16.mxu1 %v2678_v33 }
  0xbd   :  { %1871 = vmatpush1.bf16.msra.mxu0 %v2673_v34  ;;  %1914 = vmatpush1.bf16.msra.mxu1 %v2676_v35 }
  0xbe   :  { %1872 = vmatprep.subr.bf16.mxu0 %v2681_v36  ;;  %1915 = vmatprep.subr.bf16.mxu1 %v2684_v37 }
  0xc1   :  { %1873 = vmatpush2.bf16.msra.mxu0 %v2679_v38  ;;  %1916 = vmatpush2.bf16.msra.mxu1 %v2682_v39 }
  0xc2   :  { %1874 = vmatprep.subr.bf16.mxu0 %v2687_v40  ;;  %1917 = vmatprep.subr.bf16.mxu1 %v2690_v56 }
  0xc5   :  { %1875 = vmatpush2.bf16.msra.mxu0 %v2685_v41  ;;  %1918 = vmatpush2.bf16.msra.mxu1 %v2688_v42  ;;  %v2727_v41 = vld [vmem:[#allocation4 + $0x270] ss:$8 sps:$4 sm:$0xff]  }
  0xc6   :  { %1876 = vmatprep.subr.bf16.mxu0 %v2693_v43  ;;  %1919 = vmatprep.subr.bf16.mxu1 %v2696_v44  ;;  %v2730_v44 = vld [vmem:[#allocation4 + $0x370] ss:$8 sps:$4 sm:$0xff]  }
  0xc9   :  { %1877 = vmatpush2.bf16.msra.mxu0 %v2691_v45  ;;  %1920 = vmatpush2.bf16.msra.mxu1 %v2694_v46  ;;  %v2735_v45 = vld [vmem:[#allocation4 + $0x264] ss:$8 sps:$4 sm:$0xff]  }
  0xca   :  { %1878 = vmatprep.subr.bf16.mxu0 %v2699_v47  ;;  %1921 = vmatprep.subr.bf16.mxu1 %v2702_v48  ;;  %v2738_v47 = vld [vmem:[#allocation4 + $0x364] ss:$8 sps:$4 sm:$0xff]   ;;  %v2733_v48 = vld [vmem:[#allocation4 + $0x260] ss:$8 sps:$4 sm:$0xff]  }
  0xcd   :  { %1879 = vmatpush2.bf16.msra.mxu0 %v2697_v49  ;;  %1922 = vmatpush2.bf16.msra.mxu1 %v2700_v50  ;;  %v2736_v49 = vld [vmem:[#allocation4 + $0x360] ss:$8 sps:$4 sm:$0xff]   ;;  %v2741_v50 = vld [vmem:[#allocation4 + $0x254] ss:$8 sps:$4 sm:$0xff]  }
  0xce   :  { %1880 = vmatprep.subr.bf16.mxu0 %v2705_v51  ;;  %1923 = vmatprep.subr.bf16.mxu1 %v2708_v52  ;;  %v2744_v51 = vld [vmem:[#allocation4 + $0x354] ss:$8 sps:$4 sm:$0xff]   ;;  %v2739_v52 = vld [vmem:[#allocation4 + $0x250] ss:$8 sps:$4 sm:$0xff]  }
  0xd1   :  { %1881 = vmatpush2.bf16.msra.mxu0 %v2703_v53  ;;  %1924 = vmatpush2.bf16.msra.mxu1 %v2706_v54  ;;  %v2742_v53 = vld [vmem:[#allocation4 + $0x350] ss:$8 sps:$4 sm:$0xff]   ;;  %v2747_v54 = vld [vmem:[#allocation4 + $0x244] ss:$8 sps:$4 sm:$0xff]  }
  0xd2   :  { %1882 = vmatprep.subr.bf16.mxu0 %v2711_v55  ;;  %1925 = vmatprep.subr.bf16.mxu1 %v2714_v57  ;;  %v2750_v55 = vld [vmem:[#allocation4 + $0x344] ss:$8 sps:$4 sm:$0xff]   ;;  %v2745_v57 = vld [vmem:[#allocation4 + $0x240] ss:$8 sps:$4 sm:$0xff]  }
  0xd5   :  { %1883 = vmatpush2.bf16.msra.mxu0 %v2709_v58  ;;  %1926 = vmatpush2.bf16.msra.mxu1 %v2712_v59  ;;  %v2748_v58 = vld [vmem:[#allocation4 + $0x340] ss:$8 sps:$4 sm:$0xff]   ;;  %v2753_v59 = vld [vmem:[#allocation4 + $0x234] ss:$8 sps:$4 sm:$0xff]  }
  0xd6   :  { %1884 = vmatprep.subr.bf16.mxu0 %v2717_v60  ;;  %1927 = vmatprep.subr.bf16.mxu1 %v2720_v61  ;;  %v2756_v60 = vld [vmem:[#allocation4 + $0x334] ss:$8 sps:$4 sm:$0xff]   ;;  %v2751_v61 = vld [vmem:[#allocation4 + $0x230] ss:$8 sps:$4 sm:$0xff]  }
  0xd9   :  { %1885 = vmatpush2.bf16.msra.mxu0 %v2715_v62  ;;  %1928 = vmatpush2.bf16.msra.mxu1 %v2718_v63  ;;  %v2754_v62 = vld [vmem:[#allocation4 + $0x330] ss:$8 sps:$4 sm:$0xff]   ;;  %v2759_v63 = vld [vmem:[#allocation4 + $0x224] ss:$8 sps:$4 sm:$0xff]  }
  0xda   :  { %1886 = vmatprep.subr.bf16.mxu0 %v2723_v0  ;;  %1929 = vmatprep.subr.bf16.mxu1 %v2726_v1  ;;  %v2762_v0 = vld [vmem:[#allocation4 + $0x324] ss:$8 sps:$4 sm:$0xff]   ;;  %v2757_v1 = vld [vmem:[#allocation4 + $0x220] ss:$8 sps:$4 sm:$0xff]  }
  0xdd   :  { %1887 = vmatpush2.bf16.msra.mxu0 %v2721_v2  ;;  %1930 = vmatpush2.bf16.msra.mxu1 %v2724_v3  ;;  %v2760_v2 = vld [vmem:[#allocation4 + $0x320] ss:$8 sps:$4 sm:$0xff]   ;;  %v2765_v3 = vld [vmem:[#allocation4 + $0x214] ss:$8 sps:$4 sm:$0xff]  }
  0xde   :  { %1942 = vmatprep.subr.bf16.mxu0 %v2729_v4  ;;  %1985 = vmatprep.subr.bf16.mxu1 %v2732_v5  ;;  %v2768_v4 = vld [vmem:[#allocation4 + $0x314] ss:$8 sps:$4 sm:$0xff]   ;;  %v2763_v5 = vld [vmem:[#allocation4 + $0x210] ss:$8 sps:$4 sm:$0xff]  }
 0x120   :  { %v914_v14 = vpop.f32.mrf.mxu0  ;;  %v957_v16 = vpop.f32.mrf.mxu1 }
 0x121   :  { %v958_v22 = vadd.f32 %v957_v16, %v201_v15  ;;  %v915_v26 = vadd.f32 %v914_v14, %v193_v18  ;;  %v2769_v14 = vld [vmem:[#allocation4 + $0x200] ss:$8 sps:$4 sm:$0xff]   ;;  %v2777_v16 = vld [vmem:[#allocation4 + $0x2f4] ss:$8 sps:$4 sm:$0xff]  }
 0x122   :  { %v916_v19 = vpop.f32.mrf.mxu0  ;;  %v959_v20 = vpop.f32.mrf.mxu1 }
 0x123   :  { %v917_v23 = vadd.f32 %v916_v19, %v197_v17  ;;  %v960_v27 = vadd.f32 %v959_v20, %v205_v6  ;;  %v1054_v34 = vmax.f32 %v958_v22, 0.0  ;;  %v1052_v38 = vmax.f32 %v915_v26, 0.0  ;;  %v2778_v19 = vld [vmem:[#allocation4 + $0x3f0] ss:$8 sps:$4 sm:$0xff]   ;;  %v2786_v20 = vld [vmem:[#allocation4 + $0x3e4] ss:$8 sps:$4 sm:$0xff]  }
 0x124   :  { %v918_v21 = vpop.f32.mrf.mxu0  ;;  %v961_v25 = vpop.f32.mrf.mxu1  ;;  %v2784_v22 = vld [vmem:[#allocation4 + $0x3e0] ss:$8 sps:$4 sm:$0xff]   ;;  %v2790_v26 = vld [vmem:[#allocation4 + $0x3d0] ss:$8 sps:$4 sm:$0xff]  }
 0x125   :  { %v919_v24 = vadd.f32 %v918_v21, %v193_v18  ;;  %v962_v28 = vadd.f32 %v961_v25, %v201_v15  ;;  %v1053_v35 = vmax.f32 %v917_v23, 0.0  ;;  %v1055_v39 = vmax.f32 %v960_v27, 0.0  ;;  %v2772_v15 = vld [vmem:[#allocation4 + $0x300] ss:$8 sps:$4 sm:$0xff]   ;;  %v2775_v18 = vld [vmem:[#allocation4 + $0x2f0] ss:$8 sps:$4 sm:$0xff]  }
 0x126   :  { %v920_v29 = vpop.f32.mrf.mxu0  ;;  %v963_v31 = vpop.f32.mrf.mxu1  ;;  %v2781_v21 = vld [vmem:[#allocation4 + $0x2e0] ss:$8 sps:$4 sm:$0xff]   ;;  %v2789_v23 = vld [vmem:[#allocation4 + $0x2d4] ss:$8 sps:$4 sm:$0xff]   ;;  %v2787_v25 = vld [vmem:[#allocation4 + $0x2d0] ss:$8 sps:$4 sm:$0xff]  }
 0x127   :  { %v921_v30 = vadd.f32 %v920_v29, %v197_v17  ;;  %v1060_v32 = vmax.f32 %v919_v24, 0.0  ;;  %v964_v33 = vadd.f32 %v963_v31, %v205_v6  ;;  %v1062_v36 = vmax.f32 %v962_v28, 0.0  ;;  %v2780_v17 = vld [vmem:[#allocation4 + $0x3f4] ss:$8 sps:$4 sm:$0xff]   ;;  %v2783_v6 = vld [vmem:[#allocation4 + $0x2e4] ss:$8 sps:$4 sm:$0xff]  }
 0x128   :  { %v2792_v24 = vld [vmem:[#allocation4 + $0x3d4] ss:$8 sps:$4 sm:$0xff]   ;;  %v2795_v27 = vld [vmem:[#allocation4 + $0x2c4] ss:$8 sps:$4 sm:$0xff]   ;;  %v2793_v29 = vld [vmem:[#allocation4 + $0x2c0] ss:$8 sps:$4 sm:$0xff]  }
 0x129   :  { %v1061_v37 = vmax.f32 %v921_v30, 0.0  ;;  %v1063_v40 = vmax.f32 %v964_v33, 0.0  ;;  %v1068_v42 = vpack.c.bf16 %v1060_v32, %v1052_v38  ;;  %v1070_v46 = vpack.c.bf16 %v1062_v36, %v1054_v34  ;;  %v2798_v28 = vld [vmem:[#allocation4 + $0x3c4] ss:$8 sps:$4 sm:$0xff]   ;;  %v2796_v30 = vld [vmem:[#allocation4 + $0x3c0] ss:$8 sps:$4 sm:$0xff]  }
 0x12a   :  { %v2801_v31 = vld [vmem:[#allocation4 + $0x2b4] ss:$8 sps:$4 sm:$0xff]   ;;  %v2799_v33 = vld [vmem:[#allocation4 + $0x2b0] ss:$8 sps:$4 sm:$0xff]   ;;  %v212_v36 = vsub.s32 5, %v2966_v8  ;;  %v208_v38 = vsub.s32 4, %v2966_v8 }
 0x12b   :  { %v1069_v56 = vpack.c.bf16 %v1061_v37, %v1053_v35  ;;  %v1071_v43 = vpack.c.bf16 %v1063_v40, %v1055_v39  ;;  %v2804_v32 = vld [vmem:[#allocation4 + $0x3b4] ss:$8 sps:$4 sm:$0xff]   ;;  %v2802_v34 = vld [vmem:[#allocation4 + $0x3b0] ss:$8 sps:$4 sm:$0xff]   ;;  %v2807_v35 = vld [vmem:[#allocation4 + $0x2a4] ss:$8 sps:$4 sm:$0xff]  }
 0x12c   :  { %v2810_v37 = vld [vmem:[#allocation4 + $0x3a4] ss:$8 sps:$4 sm:$0xff]   ;;  %v220_v39 = vsub.s32 7, %v2966_v8  ;;  %v216_v40 = vsub.s32 6, %v2966_v8 }
 0x12d   :  { %1888 = vmatprep.mubr.bf16.mxu0 %v1069_v56  ;;  %1931 = vmatprep.mubr.bf16.mxu1 %v1071_v43  ;;  %v2805_v56 = vld [vmem:[#allocation4 + $0x2a0] ss:$8 sps:$4 sm:$0xff]   ;;  %v2813_v43 = vld [vmem:[#allocation4 + $0x294] ss:$8 sps:$4 sm:$0xff]  }
 0x12e   :  { %1889 = vmatmul.mubr.bf16.vlgmr.msra.gmra.mxu0 %v1068_v42  ;;  %1932 = vmatmul.mubr.bf16.vlgmr.msra.gmra.mxu1 %v1070_v46  ;;  %v2808_v42 = vld [vmem:[#allocation4 + $0x3a0] ss:$8 sps:$4 sm:$0xff]   ;;  %v2816_v46 = vld [vmem:[#allocation4 + $0x394] ss:$8 sps:$4 sm:$0xff]  }
 0x12f   :  { %1943 = vmatpush1.bf16.msra.mxu0 %v2727_v41  ;;  %1986 = vmatpush1.bf16.msra.mxu1 %v2730_v44 }
 0x130   :  { %1944 = vmatprep.subr.bf16.mxu0 %v2735_v45  ;;  %1987 = vmatprep.subr.bf16.mxu1 %v2738_v47  ;;  %v213_v45 = vrot.slane %v2973_v11, %v212_v36  ;;  %v209_v47 = vrot.slane %v2973_v11, %v208_v38  ;;  %v2837_v36 = vld [vmem:[%s3068_s5 + $0x40] sm:$0xff]  }
 0x133   :  { %1945 = vmatpush1.bf16.msra.mxu0 %v2733_v48  ;;  %1988 = vmatpush1.bf16.msra.mxu1 %v2736_v49  ;;  %v221_v49 = vrot.slane %v2973_v11, %v220_v39 }
 0x134   :  { %1946 = vmatprep.subr.bf16.mxu0 %v2741_v50  ;;  %1989 = vmatprep.subr.bf16.mxu1 %v2744_v51  ;;  %v217_v50 = vrot.slane %v2973_v11, %v216_v40 }
 0x137   :  { %1947 = vmatpush1.bf16.msra.mxu0 %v2739_v52  ;;  %1990 = vmatpush1.bf16.msra.mxu1 %v2742_v53  ;;  %v2811_v52 = vld [vmem:[#allocation4 + $0x290] ss:$8 sps:$4 sm:$0xff]  }
 0x138   :  { %1948 = vmatprep.subr.bf16.mxu0 %v2747_v54  ;;  %1991 = vmatprep.subr.bf16.mxu1 %v2750_v55  ;;  %v2814_v54 = vld [vmem:[#allocation4 + $0x390] ss:$8 sps:$4 sm:$0xff]   ;;  %v2819_v55 = vld [vmem:[#allocation4 + $0x284] ss:$8 sps:$4 sm:$0xff]  }
 0x13b   :  { %1949 = vmatpush1.bf16.msra.mxu0 %v2745_v57  ;;  %1992 = vmatpush1.bf16.msra.mxu1 %v2748_v58 }
 0x13c   :  { %1950 = vmatprep.subr.bf16.mxu0 %v2753_v59  ;;  %1993 = vmatprep.subr.bf16.mxu1 %v2756_v60  ;;  %v2822_v60 = vld [vmem:[#allocation4 + $0x384] ss:$8 sps:$4 sm:$0xff]  }
 0x13f   :  { %1951 = vmatpush1.bf16.msra.mxu0 %v2751_v61  ;;  %1994 = vmatpush1.bf16.msra.mxu1 %v2754_v62 }
 0x140   :  { %1952 = vmatprep.subr.bf16.mxu0 %v2759_v63  ;;  %1995 = vmatprep.subr.bf16.mxu1 %v2762_v0 }
 0x143   :  { %1953 = vmatpush1.bf16.msra.mxu0 %v2757_v1  ;;  %1996 = vmatpush1.bf16.msra.mxu1 %v2760_v2 }
 0x144   :  { %1954 = vmatprep.subr.bf16.mxu0 %v2765_v3  ;;  %1997 = vmatprep.subr.bf16.mxu1 %v2768_v4  ;;  %v2817_v3 = vld [vmem:[#allocation4 + $0x280] ss:$8 sps:$4 sm:$0xff]  }
 0x147   :  { %1955 = vmatpush1.bf16.msra.mxu0 %v2763_v5  ;;  %1998 = vmatpush1.bf16.msra.mxu1 %v2766_v7  ;;  %v2820_v7 = vld [vmem:[#allocation4 + $0x380] ss:$8 sps:$4 sm:$0xff]  }
 0x148   :  { %1956 = vmatprep.subr.bf16.mxu0 %v2771_v9  ;;  %1999 = vmatprep.subr.bf16.mxu1 %v2774_v13 }
 0x14b   :  { %1957 = vmatpush1.bf16.msra.mxu0 %v2769_v14  ;;  %2000 = vmatpush1.bf16.msra.mxu1 %v2772_v15 }
 0x14c   :  { %1958 = vmatprep.subr.bf16.mxu0 %v2777_v16  ;;  %2001 = vmatprep.subr.bf16.mxu1 %v2780_v17 }
 0x14f   :  { %1959 = vmatpush2.bf16.msra.mxu0 %v2775_v18  ;;  %2002 = vmatpush2.bf16.msra.mxu1 %v2778_v19 }
 0x150   :  { %1960 = vmatprep.subr.bf16.mxu0 %v2783_v6  ;;  %2003 = vmatprep.subr.bf16.mxu1 %v2786_v20 }
 0x153   :  { %1961 = vmatpush2.bf16.msra.mxu0 %v2781_v21  ;;  %2004 = vmatpush2.bf16.msra.mxu1 %v2784_v22  ;;  %v2823_v22 = vld [vmem:[%s3068_s5 + $0x78] sm:$0xff]  }
 0x154   :  { %1962 = vmatprep.subr.bf16.mxu0 %v2789_v23  ;;  %2005 = vmatprep.subr.bf16.mxu1 %v2792_v24  ;;  %v2824_v23 = vld [vmem:[%s3068_s5 + $0x38] sm:$0xff]   ;;  %v2825_v24 = vld [vmem:[%s3068_s5 + $0x70] sm:$0xff]  }
 0x157   :  { %1963 = vmatpush2.bf16.msra.mxu0 %v2787_v25  ;;  %2006 = vmatpush2.bf16.msra.mxu1 %v2790_v26  ;;  %v2826_v25 = vld [vmem:[%s3068_s5 + $0x30] sm:$0xff]   ;;  %v2827_v26 = vld [vmem:[%s3068_s5 + $0x68] sm:$0xff]  }
 0x158   :  { %1964 = vmatprep.subr.bf16.mxu0 %v2795_v27  ;;  %2007 = vmatprep.subr.bf16.mxu1 %v2798_v28  ;;  %v2828_v27 = vld [vmem:[%s3068_s5 + $0x28] sm:$0xff]   ;;  %v2829_v28 = vld [vmem:[%s3068_s5 + $0x60] sm:$0xff]  }
 0x15b   :  { %1965 = vmatpush2.bf16.msra.mxu0 %v2793_v29  ;;  %2008 = vmatpush2.bf16.msra.mxu1 %v2796_v30  ;;  %v2830_v29 = vld [vmem:[%s3068_s5 + $0x20] sm:$0xff]   ;;  %v2831_v30 = vld [vmem:[%s3068_s5 + $0x58] sm:$0xff]  }
 0x15c   :  { %1966 = vmatprep.subr.bf16.mxu0 %v2801_v31  ;;  %2009 = vmatprep.subr.bf16.mxu1 %v2804_v32  ;;  %v2832_v31 = vld [vmem:[%s3068_s5 + $0x18] sm:$0xff]   ;;  %v2833_v32 = vld [vmem:[%s3068_s5 + $0x50] sm:$0xff]  }
 0x15f   :  { %1967 = vmatpush2.bf16.msra.mxu0 %v2799_v33  ;;  %2010 = vmatpush2.bf16.msra.mxu1 %v2802_v34  ;;  %v2834_v33 = vld [vmem:[%s3068_s5 + $0x10] sm:$0xff]   ;;  %v2835_v34 = vld [vmem:[%s3068_s5 + $0x48] sm:$0xff]  }
 0x160   :  { %v1000_v41 = vpop.f32.mrf.mxu0  ;;  %1968 = vmatprep.subr.bf16.mxu0 %v2807_v35  ;;  %v1043_v44 = vpop.f32.mrf.mxu1  ;;  %2011 = vmatprep.subr.bf16.mxu1 %v2810_v37  ;;  %v2836_v35 = vld [vmem:[%s3068_s5 + $0x8] sm:$0xff]   ;;  %v2838_v37 = vld [vmem:[%s3068_s5] sm:$0xff]  }
 0x161   :  { %v1001_v61 = vadd.f32 %v1000_v41, %v209_v47  ;;  %v1044_v1 = vadd.f32 %v1043_v44, %v217_v50 }
 0x162   :  { %v1002_v48 = vpop.f32.mrf.mxu0  ;;  %v1045_v51 = vpop.f32.mrf.mxu1 }
 0x163   :  { %1969 = vmatpush2.bf16.msra.mxu0 %v2805_v56  ;;  %2012 = vmatpush2.bf16.msra.mxu1 %v2808_v42  ;;  %v1003_v57 = vadd.f32 %v1002_v48, %v213_v45  ;;  %v1046_v62 = vadd.f32 %v1045_v51, %v221_v49  ;;  %v1056_v15 = vmax.f32 %v1001_v61, 0.0  ;;  %v1058_v18 = vmax.f32 %v1044_v1, 0.0  ;;  %v1204_v56 = vld [vmem:[%s3067_s4] sm:$0x3] }
 0x164   :  { %v1004_v53 = vpop.f32.mrf.mxu0  ;;  %1970 = vmatprep.subr.bf16.mxu0 %v2813_v43  ;;  %v1047_v59 = vpop.f32.mrf.mxu1  ;;  %2013 = vmatprep.subr.bf16.mxu1 %v2816_v46  ;;  %v1213_v42 = vrot.slane %v1204_v56, %v196_v10  ;;  %v1209_v43 = vrot.slane %v1204_v56, %v192_v12 }
 0x165   :  { %v1005_v58 = vadd.f32 %v1004_v53, %v209_v47  ;;  %v1048_v63 = vadd.f32 %v1047_v59, %v217_v50  ;;  %v1057_v9 = vmax.f32 %v1003_v57, 0.0  ;;  %v1059_v16 = vmax.f32 %v1046_v62, 0.0 }
 0x166   :  { %v1006_v0 = vpop.f32.mrf.mxu0  ;;  %v1049_v11 = vpop.f32.mrf.mxu1 }
 0x167   :  { %v1007_v2 = vadd.f32 %v1006_v0, %v213_v45  ;;  %1971 = vmatpush2.bf16.msra.mxu0 %v2811_v52  ;;  %v1064_v4 = vmax.f32 %v1005_v58, 0.0  ;;  %v1050_v5 = vadd.f32 %v1049_v11, %v221_v49  ;;  %2014 = vmatpush2.bf16.msra.mxu1 %v2814_v54  ;;  %v1066_v13 = vmax.f32 %v1048_v63, 0.0 }
 0x168   :  { %1972 = vmatprep.subr.bf16.mxu0 %v2819_v55  ;;  %2015 = vmatprep.subr.bf16.mxu1 %v2822_v60 }
 0x169   :  { %v1065_v14 = vmax.f32 %v1007_v2, 0.0  ;;  %v1067_v17 = vmax.f32 %v1050_v5, 0.0  ;;  %v1072_v6 = vpack.c.bf16 %v1064_v4, %v1056_v15  ;;  %v1074_v21 = vpack.c.bf16 %v1066_v13, %v1058_v18 }
 0x16b   :  { %v1073_v19 = vpack.c.bf16 %v1065_v14, %v1057_v9  ;;  %1973 = vmatpush2.bf16.msra.mxu0 %v2817_v3  ;;  %v1075_v20 = vpack.c.bf16 %v1067_v17, %v1059_v16  ;;  %2016 = vmatpush2.bf16.msra.mxu1 %v2820_v7  ;;  %v2221_v16 = vld [vmem:[%s3070_s7 + $0x8] sm:$0xff]  ;;  %v2220_v17 = vld [vmem:[%s3070_s7] sm:$0xff] }
 0x16c   :  { %2589 = vmatprep.subr.bf16.mxu0 %v2823_v22  ;;  %2615 = vmatprep.subr.mxu1 %v2221_v16 }
 0x16d   :  { %1974 = vmatprep.mubr.bf16.mxu0 %v1073_v19  ;;  %2017 = vmatprep.mubr.bf16.mxu1 %v1075_v20  ;;  %v2570_v19 = vld [vmem:[%s3069_s6] ss:$0 sm:$0xff] }
 0x16e   :  { %1975 = vmatmul.mubr.bf16.vlgmr.msra.gmra.mxu0 %v1072_v6  ;;  %2018 = vmatmul.mubr.bf16.vlgmr.msra.gmra.mxu1 %v1074_v21 }
 0x16f   :  { %2590 = vmatpush3.bf16.msra.mxu0 %v2824_v23  ;;  %2616 = vmatpush3.msra.mxu1 %v2221_v16 }
 0x170   :  { %2591 = vmatprep.subr.bf16.mxu0 %v2825_v24  ;;  %2617 = vmatprep.subr.mxu1 %v2220_v17 }
 0x171   :  { %2618 = vmatpush3.msra.mxu1 %v2220_v17 }
 0x173   :  { %2592 = vmatpush3.bf16.msra.mxu0 %v2826_v25 }
 0x174   :  { %2593 = vmatprep.subr.bf16.mxu0 %v2827_v26 }
 0x177   :  { %2594 = vmatpush3.bf16.msra.mxu0 %v2828_v27 }
 0x178   :  { %2595 = vmatprep.subr.bf16.mxu0 %v2829_v28 }
 0x17b   :  { %2596 = vmatpush3.bf16.msra.mxu0 %v2830_v29 }
 0x17c   :  { %2597 = vmatprep.subr.bf16.mxu0 %v2831_v30 }
 0x17f   :  { %2598 = vmatpush3.bf16.msra.mxu0 %v2832_v31 }
 0x180   :  { %2599 = vmatprep.subr.bf16.mxu0 %v2833_v32 }
 0x183   :  { %2600 = vmatpush3.bf16.msra.mxu0 %v2834_v33 }
 0x184   :  { %2601 = vmatprep.subr.bf16.mxu0 %v2835_v34 }
 0x187   :  { %2602 = vmatpush3.bf16.msra.mxu0 %v2836_v35 }
 0x188   :  { %2603 = vmatprep.subr.bf16.mxu0 %v2837_v36 }
 0x18b   :  { %2604 = vmatpush3.bf16.msra.mxu0 %v2838_v37 }
 0x1ee   :  { %v1890_v38 = vpop.f32.mrf.mxu0  ;;  %v1933_v39 = vpop.f32.mrf.mxu1 }
 0x1ef   :  { %v1891_v47 = vadd.f32 %v1890_v38, %v1209_v43 }
 0x1f0   :  { %v1892_v40 = vpop.f32.mrf.mxu0  ;;  %v1935_v41 = vpop.f32.mrf.mxu1 }
 0x1f1   :  { %v1893_v46 = vadd.f32 %v1892_v40, %v1213_v42  ;;  %v1934_v55 = vadd.f32 %v1933_v39, %v1891_v47 }
 0x1f2   :  { %v1894_v44 = vpop.f32.mrf.mxu0  ;;  %v1937_v45 = vpop.f32.mrf.mxu1 }
 0x1f3   :  { %v1895_v49 = vadd.f32 %v1894_v44, %v1209_v43  ;;  %v1936_v52 = vadd.f32 %v1935_v41, %v1893_v46 }
 0x1f4   :  { %v1896_v48 = vpop.f32.mrf.mxu0  ;;  %v1939_v50 = vpop.f32.mrf.mxu1 }
 0x1f5   :  { %v1897_v53 = vadd.f32 %v1896_v48, %v1213_v42  ;;  %v1938_v58 = vadd.f32 %v1937_v45, %v1895_v49 }
 0x1f7   :  { %v1940_v8 = vadd.f32 %v1939_v50, %v1897_v53 }
 0x22e   :  { %v1976_v51 = vpop.f32.mrf.mxu0  ;;  %v2019_v54 = vpop.f32.mrf.mxu1 }
 0x22f   :  { %v1977_v10 = vadd.f32 %v1976_v51, %v1934_v55 }
 0x230   :  { %v1978_v57 = vpop.f32.mrf.mxu0  ;;  %v2021_v60 = vpop.f32.mrf.mxu1 }
 0x231   :  { %v1979_v59 = vadd.f32 %v1978_v57, %v1936_v52  ;;  %v2020_v11 = vadd.f32 %v2019_v54, %v1977_v10 }
 0x232   :  { %v1980_v61 = vpop.f32.mrf.mxu0  ;;  %v2023_v62 = vpop.f32.mrf.mxu1 }
 0x233   :  { %v1981_v12 = vadd.f32 %v1980_v61, %v1938_v58  ;;  %v2022_v0 = vadd.f32 %v2021_v60, %v1979_v59  ;;  %v2028_v13 = vmax.f32 %v2020_v11, 0.0 }
 0x234   :  { %v1982_v63 = vpop.f32.mrf.mxu0  ;;  %v2025_v3 = vpop.f32.mrf.mxu1 }
 0x235   :  { %v2024_v1 = vadd.f32 %v2023_v62, %v1981_v12  ;;  %v1983_v2 = vadd.f32 %v1982_v63, %v1940_v8  ;;  %v2029_v7 = vmax.f32 %v2022_v0, 0.0 }
 0x237   :  { %v2026_v4 = vadd.f32 %v2025_v3, %v1983_v2  ;;  %v2030_v5 = vmax.f32 %v2024_v1, 0.0 }
 0x239   :  { %v2031_v9 = vmax.f32 %v2026_v4, 0.0  ;;  %v2032_v15 = vpack.c.bf16 %v2030_v5, %v2028_v13 }
 0x23b   :  { %v2033_v14 = vpack.c.bf16 %v2031_v9, %v2029_v7 }
 0x23d   :  { %2201 = vmatprep.mubr.bf16.mxu0 %v2033_v14 }
 0x23e   :  { %2202 = vmatmul.mubr.bf16.vlgmr.msra.gmra.mxu0 %v2032_v15 }
 0x2fe   :  { %v2605_v18 = vpop.f32.mrf.mxu0 }
 0x300   :  { %v2606_v6 = vpop.f32.mrf.mxu0 }
 0x301   :  { %v2607_v20 = vadd.f32 %v2606_v6, %v2605_v18 }
 0x302   :  { %v2608_v21 = vpop.f32.mrf.mxu0 }
 0x303   :  { %v2204_v22 = vadd.f32 %v2607_v20, %v2570_v19 }
 0x304   :  { %v2609_v23 = vpop.f32.mrf.mxu0 }
 0x305   :  { %v2210_v24 = vsub.f32 0.0, %v2204_v22  ;;  %v2610_v25 = vadd.f32 %v2609_v23, %v2608_v21 }
 0x307   :  { %v2212_v26 = vmul.f32 1.442695, %v2210_v24  ;;  %v2207_v27 = vadd.f32 %v2610_v25, %v2570_v19 }
 0x309   :  { %2839 = vpow2.f32 %v2212_v26  ;;  %v2211_v28 = vsub.f32 0.0, %v2207_v27 }
 0x30b   :  { %v2214_v29 = vmul.f32 1.442695, %v2211_v28 }
 0x30d   :  { %2841 = vpow2.f32 %v2214_v29 }
 0x316   :  { %v2840_v30 = vpop.eup %2839 }
 0x317   :  { %v2216_v31 = vadd.f32 1.0, %v2840_v30 }
 0x319   :  { %2843 = vrcp.f32 %v2216_v31 }
 0x31a   :  { %v2842_v32 = vpop.eup %2841 }
 0x31b   :  { %v2217_v33 = vadd.f32 1.0, %v2842_v32 }
 0x31d   :  { %2845 = vrcp.f32 %v2217_v33 }
 0x326   :  { %v2844_v34 = vpop.eup %2843 }
 0x327   :  { %2619 = vmatprep.mubr.msk.f32.mxu1 %vm2222_vm0, %v2844_v34 }
 0x32a   :  { %v2846_v35 = vpop.eup %2845 }
 0x32b   :  { %2620 = vmatmul.mubr.msk.f32.vlgmr.msra.gmra.mxu1 %vm2222_vm0, %v2846_v35 }
 0x3eb   :  { %v2621_v36 = vpop.f32.mrf.mxu1 }
 0x3ec   :  { %2305 = vst [vmem:[%s3071_s8 + $0x8] sm:$0xff] %v2621_v36 }
 0x3ed   :  { %v2295_v37 = vpop.f32.mrf.mxu1 }
 0x3ee   :  { %2304 = vst [vmem:[%s3071_s8] sm:$0xff] %v2295_v37 }
 0x3ef   :  { %2310 = vsyncpa [#allocation3], 1 }
 0x3f0   :  { %2311 = vsyncpa [#allocation5], 1 }

</bundles_post_ra>
